<compile_context>
chip_gen: v7x
topology: tpu7x:2x2x1
jax: 0.10.0
libtpu: 0.0.40
codegen_flags: <defaults>
</compile_context>

<pallas_src>
import functools

import jax
import jax.numpy as jnp
from jax.experimental import pallas as pl
from jax.experimental.pallas import tpu as pltpu


# ----------------------------------------------------------------------------
# Helpers
# ----------------------------------------------------------------------------
def _shift3(rows_f32):
    """(R, W, P) f32 -> (R, W, 3P) bf16; channel slabs = [x-1 tap, x tap, x+1 tap]."""
    _, W, _ = rows_f32.shape
    col = jax.lax.broadcasted_iota(jnp.int32, rows_f32.shape, 1)
    left = jnp.where(col == 0, 0.0, pltpu.roll(rows_f32, 1, axis=1))          # in[x-1]
    right = jnp.where(col == W - 1, 0.0, pltpu.roll(rows_f32, W - 1, axis=1))  # in[x+1]
    return jnp.concatenate([left, rows_f32, right], axis=-1).astype(jnp.bfloat16)


# ----------------------------------------------------------------------------
# Fused bottleneck kernel
# ----------------------------------------------------------------------------
def _fused_bottleneck_kernel(x_ref, x_hbm, w1_ref, w2_ref, w3_ref,
                             s1_ref, b1_ref, s2_ref, b2_ref, s3_ref, b3_ref,
                             o_ref, halo, o1_buf, sem, *, fuse_k9):
    # x_ref  : (1, th, W, Cin) f32   auto-pipelined row tile of x (also the residual)
    # x_hbm  : (N, H, W, Cin)  f32   raw HBM view of x (halo rows only)
    # w1_ref : (Cin, P)        bf16  1x1 conv1 weight
    # w2_ref : (3, 3P, P) or (9P, P) bf16  3x3 conv2 weight (rows = [dy*3P +] dx*P + cin)
    # w3_ref : (P, 4P)         bf16  1x1 conv3 weight
    # s*/b*  : (1, C)          f32   folded BN scale / bias
    # o_ref  : (1, th, W, 4P)  f32   output tile
    # halo   : VMEM (2, W, Cin) f32       top / bottom halo rows of x
    # o1_buf : VMEM (th+2, W, 3P) bf16    pre-shifted out1 with 1-row halo on each side
    n = pl.program_id(0)
    r = pl.program_id(1)
    nr = pl.num_programs(1)

    _, th, W, Cin = x_ref.shape
    H = x_hbm.shape[1]
    P = w1_ref.shape[1]
    Cout = w3_ref.shape[1]
    row0 = r * th

    # ---- kick off the (index-clamped) halo-row DMAs so they overlap conv1 on the tile.
    top_row = jnp.maximum(row0 - 1, 0)
    bot_row = jnp.minimum(row0 + th, H - 1)
    cp_top = pltpu.make_async_copy(x_hbm.at[n, pl.ds(top_row, 1)],
                                   halo.at[pl.ds(0, 1)], sem.at[0])
    cp_bot = pltpu.make_async_copy(x_hbm.at[n, pl.ds(bot_row, 1)],
                                   halo.at[pl.ds(1, 1)], sem.at[1])
    cp_top.start()
    cp_bot.start()

    # ---- conv1 (1x1) + bn1 + relu on the resident row tile (bf16 MXU, f32 epilogue)
    xm_bf = x_ref[0].reshape(th * W, Cin).astype(jnp.bfloat16)
    o1 = jnp.dot(xm_bf, w1_ref[...], preferred_element_type=jnp.float32)
    o1 = jnp.maximum(o1 * s1_ref[...] + b1_ref[...], 0.0)
    o1_buf[pl.ds(1, th)] = _shift3(o1.reshape(th, W, P))

    # ---- halo rows of out1: one merged (2W, Cin) conv1 matmul, then zero at boundaries
    cp_top.wait()
    cp_bot.wait()
    hh = halo[...].reshape(2 * W, Cin).astype(jnp.bfloat16)
    ho = jnp.dot(hh, w1_ref[...], preferred_element_type=jnp.float32)
    ho = jnp.maximum(ho * s1_ref[...] + b1_ref[...], 0.0)
    ho3 = _shift3(ho.reshape(2, W, P))
    o1_buf[pl.ds(0, 1)] = ho3[0:1]
    o1_buf[pl.ds(th + 1, 1)] = ho3[1:2]

    @pl.when(r == 0)
    def _():
        o1_buf[pl.ds(0, 1)] = jnp.zeros((1, W, 3 * P), jnp.bfloat16)

    @pl.when(r == nr - 1)
    def _():
        o1_buf[pl.ds(th + 1, 1)] = jnp.zeros((1, W, 3 * P), jnp.bfloat16)

    # ---- conv2 (3x3, pad 1) + bn2 + relu, reading the pre-shifted bf16 out1 buffer
    if fuse_k9:
        # single K=9P matmul (better MXU occupancy for small P)
        x9 = jnp.concatenate([o1_buf[pl.ds(dy, th)] for dy in range(3)], axis=-1)
        acc = jnp.dot(x9.reshape(th * W, 9 * P), w2_ref[...],
                      preferred_element_type=jnp.float32)
    else:
        acc = jnp.zeros((th * W, P), jnp.float32)
        for dy in range(3):
            acc = acc + jnp.dot(o1_buf[pl.ds(dy, th)].reshape(th * W, 3 * P),
                                w2_ref[dy], preferred_element_type=jnp.float32)
    o2 = jnp.maximum(acc * s2_ref[...] + b2_ref[...], 0.0).astype(jnp.bfloat16)

    # ---- conv3 (1x1) + bn3 + identity residual (re-read resident x tile) + relu
    y = jnp.dot(o2, w3_ref[...], preferred_element_type=jnp.float32)
    y = y * s3_ref[...] + b3_ref[...] + x_ref[0].reshape(th * W, Cin)
    o_ref[0] = jnp.maximum(y, 0.0).reshape(th, W, Cout)


# ----------------------------------------------------------------------------
# Generation-aware VMEM budgeting and row-tile selection
# ----------------------------------------------------------------------------
def _vmem_budgets():
    try:
        cap = pltpu.get_tpu_info().vmem_capacity_bytes
    except Exception:
        cap = 64 * 1024 * 1024  # be conservative (v7x per-TC VMEM)
    if cap >= 100 * 1024 * 1024:                       # v5e / v6e: 128 MiB physical
        return 56 * 1024 * 1024, 96 * 1024 * 1024
    return 24 * 1024 * 1024, 32 * 1024 * 1024          # v7x: 64 MiB physical


def _estimate_vmem_bytes(th, W, Cin, P, fuse_k9):
    Cout = 4 * P
    b = 0
    b += 2 * 4 * th * W * Cin                      # x tile (f32, double-buffered)
    b += 2 * 4 * th * W * Cout                     # out tile (f32, double-buffered)
    b += 2 * (th + 2) * W * 3 * P                  # o1_buf scratch (bf16)
    b += 2 * 4 * W * Cin                           # halo scratch (f32)
    b += 2 * 2 * (Cin * P + 9 * P * P + P * Cout)  # bf16 weights (x2 buffers)
    b += 2 * 4 * (4 * P + 2 * Cout)                # BN scale/bias (x2 buffers)
    # in-kernel temporaries: bf16 x copy, o1 f32, shifted slab, acc f32, o2 bf16, y f32
    b += th * W * (2 * Cin + 4 * P + 2 * 3 * P + 4 * P + 2 * P + 4 * Cout)
    if fuse_k9:
        b += 2 * th * W * 9 * P                    # im2col slab (bf16)
    return b


def _pick_row_tile(N, H, W, Cin, P, budget, min_grid_steps=4):
    divs = [d for d in range(1, H + 1) if H % d == 0]
    fits = [d for d in divs if _estimate_vmem_bytes(d, W, Cin, P, False) <= budget]
    if not fits:
        return 1
    preferred = [d for d in fits if N * (H // d) >= min_grid_steps]
    return preferred[-1] if preferred else fits[-1]


# ----------------------------------------------------------------------------
# Forward pass wrappers
# ----------------------------------------------------------------------------
def bottleneck0_forward_nhwc(x_nhwc, params, row_tile=None, fuse_k9=None):
    N, H, W, Cin = x_nhwc.shape
    P = params["w1"].shape[1]
    Cout = params["w3"].shape[1]
    assert Cout == Cin, "identity residual requires inplanes == planes * 4"

    budget, vmem_limit = _vmem_budgets()
    th = row_tile if row_tile is not None else _pick_row_tile(N, H, W, Cin, P, budget)
    assert H % th == 0, f"row tile {th} must divide H={H}"
    if fuse_k9 is None:
        fuse_k9 = (P <= 128) and _estimate_vmem_bytes(th, W, Cin, P, True) <= budget
    grid = (N, H // th)

    # bf16 MXU operands (accumulation stays f32 inside the kernel)
    w1 = params["w1"].astype(jnp.bfloat16)
    w3 = params["w3"].astype(jnp.bfloat16)
    if fuse_k9:
        w2 = params["w2_cat9"].astype(jnp.bfloat16)
        w2_spec = pl.BlockSpec((9 * P, P), lambda n, r: (0, 0))
    else:
        w2 = params["w2_cat3"].astype(jnp.bfloat16)
        w2_spec = pl.BlockSpec((3, 3 * P, P), lambda n, r: (0, 0, 0))

    inv = lambda n, r: (0, 0)       # grid-invariant 2-D operands

    flops = 2 * N * H * W * P * (Cin + 9 * P + Cout)
    weight_bytes = 2 * (Cin * P + 9 * P * P + P * Cout) + 4 * (4 * P + 2 * Cout)
    cost = pl.CostEstimate(flops=flops, transcendentals=0,
                           bytes_accessed=4 * N * H * W * (Cin + Cout) + weight_bytes)

    kernel = functools.partial(_fused_bottleneck_kernel, fuse_k9=fuse_k9)

    # TODO(synk): mark the grid-invariant weight/BN specs pipeline_mode=pl.Buffered(1)
    # when single-buffered invariant operands are supported; their x2 default buffers
    # are instead accounted for in _estimate_vmem_bytes.
    return pl.pallas_call(
        kernel,
        out_shape=jax.ShapeDtypeStruct((N, H, W, Cout), jnp.float32),
        grid=grid,
        in_specs=[
            pl.BlockSpec((1, th, W, Cin), lambda n, r: (n, r, 0, 0)),    # x (tiled)
            pl.BlockSpec(memory_space=pl.ANY),                           # x (HBM, halos)
            pl.BlockSpec((Cin, P), inv),                                 # w1 (bf16)
            w2_spec,                                                     # w2 (bf16)
            pl.BlockSpec((P, Cout), inv),                                # w3 (bf16)
            pl.BlockSpec((1, P), inv), pl.BlockSpec((1, P), inv),        # s1, b1
            pl.BlockSpec((1, P), inv), pl.BlockSpec((1, P), inv),        # s2, b2
            pl.BlockSpec((1, Cout), inv), pl.BlockSpec((1, Cout), inv),  # s3, b3
        ],
        out_specs=pl.BlockSpec((1, th, W, Cout), lambda n, r: (n, r, 0, 0)),
        scratch_shapes=[
            pltpu.VMEM((2, W, Cin), jnp.float32),             # x halo rows
            pltpu.VMEM((th + 2, W, 3 * P), jnp.bfloat16),     # pre-shifted out1 (+halos)
            pltpu.SemaphoreType.DMA((2,)),
        ],
        compiler_params=pltpu.CompilerParams(
            dimension_semantics=("parallel", "parallel"),
            vmem_limit_bytes=vmem_limit,
        ),
        cost_estimate=cost,
    )(x_nhwc, x_nhwc, w1, w2, w3,
      params["s1"], params["b1"], params["s2"], params["b2"],
      params["s3"], params["b3"])


def bottleneck0_forward(x_nchw, params, row_tile=None, fuse_k9=None):
    # NCHW boundary (matches the PyTorch module). Use the NHWC entry point to avoid the
    # two HBM transpose passes when embedded in an NHWC network.
    x_nhwc = jnp.transpose(x_nchw, (0, 2, 3, 1))
    out_nhwc = bottleneck0_forward_nhwc(x_nhwc, params, row_tile=row_tile, fuse_k9=fuse_k9)
    return jnp.transpose(out_nhwc, (0, 3, 1, 2))


# ----------------------------------------------------------------------------
# Parameter construction (deterministic, mirrors nn.Module __init__ shapes)
# ----------------------------------------------------------------------------
def make_params(key, inplanes, planes, eps=1e-5):
    expansion = 4
    ks = jax.random.split(key, 15)

    def bn_fold(kg, kb, km, kv, C):
        gamma = 1.0 + 0.1 * jax.random.normal(kg, (C,), jnp.float32)
        beta = 0.1 * jax.random.normal(kb, (C,), jnp.float32)
        mean = 0.1 * jax.random.normal(km, (C,), jnp.float32)
        var = 1.0 + 0.5 * jax.random.uniform(kv, (C,), jnp.float32)
        scale = gamma * jax.lax.rsqrt(var + eps)
        bias = beta - mean * scale
        return scale, bias

    # PyTorch conv weights: (Cout, Cin, kh, kw)
    w1_t = 0.2 * jax.random.normal(ks[0], (planes, inplanes, 1, 1), jnp.float32)
    w2_t = 0.2 * jax.random.normal(ks[1], (planes, planes, 3, 3), jnp.float32)
    w3_t = 0.2 * jax.random.normal(ks[2], (planes * expansion, planes, 1, 1), jnp.float32)

    s1, b1 = bn_fold(ks[3], ks[4], ks[5], ks[6], planes)
    s2, b2 = bn_fold(ks[7], ks[8], ks[9], ks[10], planes)
    s3, b3 = bn_fold(ks[11], ks[12], ks[13], ks[14], planes * expansion)

    w2_hwio = jnp.transpose(w2_t, (2, 3, 1, 0))            # (dy, dx, Cin, Cout)

    return {
        # kernel-ready layouts (kept in f32; wrapper casts to bf16 for the MXU)
        "w1": jnp.transpose(w1_t[:, :, 0, 0]),                        # (Cin, P)
        "w2_cat3": w2_hwio.reshape(3, 3 * planes, planes),            # (3, 3P, P); dx*P+cin
        "w2_cat9": w2_hwio.reshape(9 * planes, planes),               # (9P, P);  dy*3P+dx*P+cin
        "w3": jnp.transpose(w3_t[:, :, 0, 0]),                        # (P, 4P)
        "s1": s1.reshape(1, -1), "b1": b1.reshape(1, -1),
        "s2": s2.reshape(1, -1), "b2": b2.reshape(1, -1),
        "s3": s3.reshape(1, -1), "b3": b3.reshape(1, -1),
        # HWIO layouts for the pure-JAX reference
        "w1_hwio": jnp.transpose(w1_t, (2, 3, 1, 0)),
        "w2_hwio": w2_hwio,
        "w3_hwio": jnp.transpose(w3_t, (2, 3, 1, 0)),
    }


# ----------------------------------------------------------------------------
# Pure-JAX reference (for verification)
# ----------------------------------------------------------------------------
def reference_forward(x_nchw, params):
    x = jnp.transpose(x_nchw, (0, 2, 3, 1))
    dn = ("NHWC", "HWIO", "NHWC")
    prec = jax.lax.Precision.HIGHEST

    y = jax.lax.conv_general_dilated(x, params["w1_hwio"], (1, 1), "VALID",
                                     dimension_numbers=dn, precision=prec)
    y = jnp.maximum(y * params["s1"].reshape(1, 1, 1, -1) + params["b1"].reshape(1, 1, 1, -1), 0.0)

    y = jax.lax.conv_general_dilated(y, params["w2_hwio"], (1, 1), ((1, 1), (1, 1)),
                                     dimension_numbers=dn, precision=prec)
    y = jnp.maximum(y * params["s2"].reshape(1, 1, 1, -1) + params["b2"].reshape(1, 1, 1, -1), 0.0)

    y = jax.lax.conv_general_dilated(y, params["w3_hwio"], (1, 1), "VALID",
                                     dimension_numbers=dn, precision=prec)
    y = y * params["s3"].reshape(1, 1, 1, -1) + params["b3"].reshape(1, 1, 1, -1)
    y = jnp.maximum(y + x, 0.0)
    return jnp.transpose(y, (0, 3, 1, 2))


if __name__ == "__main__":
    # Small shapes consistent with the module: identity residual requires
    # inplanes == planes * expansion.
    N, H, W = 2, 16, 16
    planes = 4
    inplanes = planes * 4  # 16

    key = jax.random.PRNGKey(0)
    kx, kp = jax.random.split(key)
    x = jax.random.normal(kx, (N, inplanes, H, W), jnp.float32)
    params = make_params(kp, inplanes, planes)

    ref = jax.block_until_ready(reference_forward(x, params))

    # Exercise both conv2 paths: default (fused K=9P at this P) and the 3x K=3P form.
    # Auto row-tile gives th=8 -> grid (2, 2), exercising the halo DMA / boundary paths.
    for fuse in (None, False):
        out = jax.block_until_ready(bottleneck0_forward(x, params, fuse_k9=fuse))
        assert out.shape == (N, inplanes, H, W)
        err = float(jnp.max(jnp.abs(out - ref)))
        # bf16 MXU operands vs. HIGHEST-precision f32 reference -> relaxed tolerance.
        assert jnp.allclose(out, ref, atol=3e-2, rtol=3e-2), \
            f"max abs err = {err} (fuse_k9={fuse})"

    print("KERNEL_OK")
</pallas_src>

<mosaic_0001>
module attributes {stable_mosaic.version = 11 : i64} {
  func.func @_fused_bottleneck_kernel(%arg0: i32, %arg1: i32, %arg2: memref<1x8x16x16xf32, #tpu.memory_space<vmem>>, %arg3: memref<2x16x16x16xf32, #tpu.memory_space<any>>, %arg4: memref<16x4xbf16, #tpu.memory_space<vmem>>, %arg5: memref<36x4xbf16, #tpu.memory_space<vmem>>, %arg6: memref<4x16xbf16, #tpu.memory_space<vmem>>, %arg7: memref<1x4xf32, #tpu.memory_space<vmem>>, %arg8: memref<1x4xf32, #tpu.memory_space<vmem>>, %arg9: memref<1x4xf32, #tpu.memory_space<vmem>>, %arg10: memref<1x4xf32, #tpu.memory_space<vmem>>, %arg11: memref<1x16xf32, #tpu.memory_space<vmem>>, %arg12: memref<1x16xf32, #tpu.memory_space<vmem>>, %arg13: memref<1x8x16x16xf32, #tpu.memory_space<vmem>>, %arg14: memref<2x16x16xf32, #tpu.memory_space<vmem>>, %arg15: memref<10x16x12xbf16, #tpu.memory_space<vmem>>, %arg16: memref<2x!tpu.dma_semaphore, #tpu.memory_space<semaphore_mem>>) attributes {dimension_semantics = [#tpu.dimension_semantics<parallel>, #tpu.dimension_semantics<parallel>], iteration_bounds = array<i64: 2, 2>, scalar_prefetch = 0 : i64, scratch_operands = 3 : i64, tpu.core_type = #tpu.core_type<tc>, window_params = [{transform_indices = @transform_0, window_bounds = array<i64: 1, 8, 16, 16>}, {}, {pipeline_mode = #tpu.pipeline_mode<synchronous>, transform_indices = @transform_2, window_bounds = array<i64: 16, 4>}, {pipeline_mode = #tpu.pipeline_mode<synchronous>, transform_indices = @transform_3, window_bounds = array<i64: 36, 4>}, {pipeline_mode = #tpu.pipeline_mode<synchronous>, transform_indices = @transform_4, window_bounds = array<i64: 4, 16>}, {pipeline_mode = #tpu.pipeline_mode<synchronous>, transform_indices = @transform_5, window_bounds = array<i64: 1, 4>}, {pipeline_mode = #tpu.pipeline_mode<synchronous>, transform_indices = @transform_6, window_bounds = array<i64: 1, 4>}, {pipeline_mode = #tpu.pipeline_mode<synchronous>, transform_indices = @transform_7, window_bounds = array<i64: 1, 4>}, {pipeline_mode = #tpu.pipeline_mode<synchronous>, transform_indices = @transform_8, window_bounds = array<i64: 1, 4>}, {pipeline_mode = #tpu.pipeline_mode<synchronous>, transform_indices = @transform_9, window_bounds = array<i64: 1, 16>}, {pipeline_mode = #tpu.pipeline_mode<synchronous>, transform_indices = @transform_10, window_bounds = array<i64: 1, 16>}, {transform_indices = @transform_11, window_bounds = array<i64: 1, 8, 16, 16>}]} {
    %c8_i32 = arith.constant 8 : i32
    %0 = arith.muli %arg1, %c8_i32 : i32
    %c1_i32 = arith.constant 1 : i32
    %1 = arith.subi %0, %c1_i32 : i32
    %c0_i32 = arith.constant 0 : i32
    %2 = arith.maxsi %1, %c0_i32 : i32
    %c8_i32_0 = arith.constant 8 : i32
    %3 = arith.addi %0, %c8_i32_0 : i32
    %c15_i32 = arith.constant 15 : i32
    %4 = arith.minsi %3, %c15_i32 : i32
    %c0_i32_1 = arith.constant 0 : i32
    %c0_i32_2 = arith.constant 0 : i32
    %c0_i32_3 = arith.constant 0 : i32
    %5 = tpu.memref_slice %arg3[%arg0, %2, %c0_i32_2, %c0_i32_3] : memref<2x16x16x16xf32, #tpu.memory_space<any>> -> memref<1x1x16x16xf32, #tpu.memory_space<any>>
    %6 = tpu.memref_squeeze %5 : memref<1x1x16x16xf32, #tpu.memory_space<any>> -> memref<1x16x16xf32, #tpu.memory_space<any>>
    %c0_i32_4 = arith.constant 0 : i32
    %c0_i32_5 = arith.constant 0 : i32
    %c0_i32_6 = arith.constant 0 : i32
    %7 = tpu.memref_slice %arg14[%c0_i32_4, %c0_i32_5, %c0_i32_6] : memref<2x16x16xf32, #tpu.memory_space<vmem>> -> memref<1x16x16xf32, #tpu.memory_space<vmem>>
    %8 = tpu.memref_slice %arg16[%c0_i32_1] : memref<2x!tpu.dma_semaphore, #tpu.memory_space<semaphore_mem>> -> memref<1x!tpu.dma_semaphore, #tpu.memory_space<semaphore_mem>>
    %9 = tpu.memref_squeeze %8 : memref<1x!tpu.dma_semaphore, #tpu.memory_space<semaphore_mem>> -> memref<!tpu.dma_semaphore, #tpu.memory_space<semaphore_mem>>
    tpu.enqueue_dma source(%6 : memref<1x16x16xf32, #tpu.memory_space<any>>) target(%7 : memref<1x16x16xf32, #tpu.memory_space<vmem>>) target_semaphore(%9 : memref<!tpu.dma_semaphore, #tpu.memory_space<semaphore_mem>>)
    %c1_i32_7 = arith.constant 1 : i32
    %c0_i32_8 = arith.constant 0 : i32
    %c0_i32_9 = arith.constant 0 : i32
    %10 = tpu.memref_slice %arg3[%arg0, %4, %c0_i32_8, %c0_i32_9] : memref<2x16x16x16xf32, #tpu.memory_space<any>> -> memref<1x1x16x16xf32, #tpu.memory_space<any>>
    %11 = tpu.memref_squeeze %10 : memref<1x1x16x16xf32, #tpu.memory_space<any>> -> memref<1x16x16xf32, #tpu.memory_space<any>>
    %c1_i32_10 = arith.constant 1 : i32
    %c0_i32_11 = arith.constant 0 : i32
    %c0_i32_12 = arith.constant 0 : i32
    %12 = tpu.memref_slice %arg14[%c1_i32_10, %c0_i32_11, %c0_i32_12] : memref<2x16x16xf32, #tpu.memory_space<vmem>> -> memref<1x16x16xf32, #tpu.memory_space<vmem>>
    %13 = tpu.memref_slice %arg16[%c1_i32_7] : memref<2x!tpu.dma_semaphore, #tpu.memory_space<semaphore_mem>> -> memref<1x!tpu.dma_semaphore, #tpu.memory_space<semaphore_mem>>
    %14 = tpu.memref_squeeze %13 : memref<1x!tpu.dma_semaphore, #tpu.memory_space<semaphore_mem>> -> memref<!tpu.dma_semaphore, #tpu.memory_space<semaphore_mem>>
    tpu.enqueue_dma source(%11 : memref<1x16x16xf32, #tpu.memory_space<any>>) target(%12 : memref<1x16x16xf32, #tpu.memory_space<vmem>>) target_semaphore(%14 : memref<!tpu.dma_semaphore, #tpu.memory_space<semaphore_mem>>)
    %c0 = arith.constant 0 : index
    %c0_13 = arith.constant 0 : index
    %c0_14 = arith.constant 0 : index
    %c0_15 = arith.constant 0 : index
    %15 = vector.load %arg2[%c0, %c0_13, %c0_14, %c0_15] : memref<1x8x16x16xf32, #tpu.memory_space<vmem>>, vector<1x8x16x16xf32>
    %16 = vector.shape_cast %15 : vector<1x8x16x16xf32> to vector<8x16x16xf32>
    %17 = vector.shape_cast %16 : vector<8x16x16xf32> to vector<128x16xf32>
    %18 = arith.truncf %17 : vector<128x16xf32> to vector<128x16xbf16>
    %c0_16 = arith.constant 0 : index
    %c0_17 = arith.constant 0 : index
    %19 = vector.load %arg4[%c0_16, %c0_17] : memref<16x4xbf16, #tpu.memory_space<vmem>>, vector<16x4xbf16>
    %cst = arith.constant dense<0.000000e+00> : vector<128x4xf32>
    %20 = tpu.matmul %18, %19, %cst {dimension_numbers = #tpu.dot_dimension_numbers<[1], [0], [0], [1], [0, 0, 1, 1], [], []>} : vector<128x16xbf16>, vector<16x4xbf16>, vector<128x4xf32> -> vector<128x4xf32>
    %c0_18 = arith.constant 0 : index
    %c0_19 = arith.constant 0 : index
    %21 = vector.load %arg7[%c0_18, %c0_19] : memref<1x4xf32, #tpu.memory_space<vmem>>, vector<1x4xf32>
    %22 = vector.broadcast %21 : vector<1x4xf32> to vector<128x4xf32>
    %23 = arith.mulf %20, %22 : vector<128x4xf32>
    %c0_20 = arith.constant 0 : index
    %c0_21 = arith.constant 0 : index
    %24 = vector.load %arg8[%c0_20, %c0_21] : memref<1x4xf32, #tpu.memory_space<vmem>>, vector<1x4xf32>
    %25 = vector.broadcast %24 : vector<1x4xf32> to vector<128x4xf32>
    %26 = arith.addf %23, %25 : vector<128x4xf32>
    %cst_22 = arith.constant 0.000000e+00 : f32
    %27 = vector.broadcast %cst_22 : f32 to vector<128x4xf32>
    %28 = arith.maximumf %26, %27 : vector<128x4xf32>
    %29 = vector.shape_cast %28 : vector<128x4xf32> to vector<8x16x4xf32>
    %30 = tpu.iota {dimensions = array<i32: 1>} : vector<8x16x4xi32>
    %c0_i32_23 = arith.constant 0 : i32
    %31 = vector.broadcast %c0_i32_23 : i32 to vector<8x16x4xi32>
    %32 = arith.cmpi eq, %30, %31 : vector<8x16x4xi32>
    %c1_i32_24 = arith.constant 1 : i32
    %33 = tpu.dynamic_rotate %29 by %c1_i32_24 dim 1 : vector<8x16x4xf32>, i32 -> vector<8x16x4xf32>
    %cst_25 = arith.constant 0.000000e+00 : f32
    %34 = vector.broadcast %cst_25 : f32 to vector<8x16x4xf32>
    %35 = arith.select %32, %34, %33 : vector<8x16x4xi1>, vector<8x16x4xf32>
    %c15_i32_26 = arith.constant 15 : i32
    %36 = vector.broadcast %c15_i32_26 : i32 to vector<8x16x4xi32>
    %37 = arith.cmpi eq, %30, %36 : vector<8x16x4xi32>
    %c15_i32_27 = arith.constant 15 : i32
    %38 = tpu.dynamic_rotate %29 by %c15_i32_27 dim 1 : vector<8x16x4xf32>, i32 -> vector<8x16x4xf32>
    %cst_28 = arith.constant 0.000000e+00 : f32
    %39 = vector.broadcast %cst_28 : f32 to vector<8x16x4xf32>
    %40 = arith.select %37, %39, %38 : vector<8x16x4xi1>, vector<8x16x4xf32>
    %41 = tpu.concatenate %35, %29, %40 in 2 : vector<8x16x4xf32>, vector<8x16x4xf32>, vector<8x16x4xf32> -> vector<8x16x12xf32>
    %42 = arith.truncf %41 : vector<8x16x12xf32> to vector<8x16x12xbf16>
    %c1 = arith.constant 1 : index
    %c0_29 = arith.constant 0 : index
    %c0_30 = arith.constant 0 : index
    %43 = vector.load %arg15[%c1, %c0_29, %c0_30] : memref<10x16x12xbf16, #tpu.memory_space<vmem>>, vector<8x16x12xbf16>
    tpu.vector_store %arg15[%c1, %c0_29, %c0_30], %42 {strides = array<i32>} : memref<10x16x12xbf16, #tpu.memory_space<vmem>>, vector<8x16x12xbf16>,
    %c0_i32_31 = arith.constant 0 : i32
    %c0_i32_32 = arith.constant 0 : i32
    %c0_i32_33 = arith.constant 0 : i32
    %44 = tpu.memref_slice %arg3[%arg0, %2, %c0_i32_32, %c0_i32_33] : memref<2x16x16x16xf32, #tpu.memory_space<any>> -> memref<1x1x16x16xf32, #tpu.memory_space<any>>
    %45 = tpu.memref_squeeze %44 : memref<1x1x16x16xf32, #tpu.memory_space<any>> -> memref<1x16x16xf32, #tpu.memory_space<any>>
    %c0_i32_34 = arith.constant 0 : i32
    %c0_i32_35 = arith.constant 0 : i32
    %c0_i32_36 = arith.constant 0 : i32
    %46 = tpu.memref_slice %arg14[%c0_i32_34, %c0_i32_35, %c0_i32_36] : memref<2x16x16xf32, #tpu.memory_space<vmem>> -> memref<1x16x16xf32, #tpu.memory_space<vmem>>
    %47 = tpu.memref_slice %arg16[%c0_i32_31] : memref<2x!tpu.dma_semaphore, #tpu.memory_space<semaphore_mem>> -> memref<1x!tpu.dma_semaphore, #tpu.memory_space<semaphore_mem>>
    %48 = tpu.memref_squeeze %47 : memref<1x!tpu.dma_semaphore, #tpu.memory_space<semaphore_mem>> -> memref<!tpu.dma_semaphore, #tpu.memory_space<semaphore_mem>>
    tpu.wait_dma2 semaphore(%48 : memref<!tpu.dma_semaphore, #tpu.memory_space<semaphore_mem>>) src(%45 : memref<1x16x16xf32, #tpu.memory_space<any>>) dst(%46 : memref<1x16x16xf32, #tpu.memory_space<vmem>>)
    %c1_i32_37 = arith.constant 1 : i32
    %c0_i32_38 = arith.constant 0 : i32
    %c0_i32_39 = arith.constant 0 : i32
    %49 = tpu.memref_slice %arg3[%arg0, %4, %c0_i32_38, %c0_i32_39] : memref<2x16x16x16xf32, #tpu.memory_space<any>> -> memref<1x1x16x16xf32, #tpu.memory_space<any>>
    %50 = tpu.memref_squeeze %49 : memref<1x1x16x16xf32, #tpu.memory_space<any>> -> memref<1x16x16xf32, #tpu.memory_space<any>>
    %c1_i32_40 = arith.constant 1 : i32
    %c0_i32_41 = arith.constant 0 : i32
    %c0_i32_42 = arith.constant 0 : i32
    %51 = tpu.memref_slice %arg14[%c1_i32_40, %c0_i32_41, %c0_i32_42] : memref<2x16x16xf32, #tpu.memory_space<vmem>> -> memref<1x16x16xf32, #tpu.memory_space<vmem>>
    %52 = tpu.memref_slice %arg16[%c1_i32_37] : memref<2x!tpu.dma_semaphore, #tpu.memory_space<semaphore_mem>> -> memref<1x!tpu.dma_semaphore, #tpu.memory_space<semaphore_mem>>
    %53 = tpu.memref_squeeze %52 : memref<1x!tpu.dma_semaphore, #tpu.memory_space<semaphore_mem>> -> memref<!tpu.dma_semaphore, #tpu.memory_space<semaphore_mem>>
    tpu.wait_dma2 semaphore(%53 : memref<!tpu.dma_semaphore, #tpu.memory_space<semaphore_mem>>) src(%50 : memref<1x16x16xf32, #tpu.memory_space<any>>) dst(%51 : memref<1x16x16xf32, #tpu.memory_space<vmem>>)
    %c0_43 = arith.constant 0 : index
    %c0_44 = arith.constant 0 : index
    %c0_45 = arith.constant 0 : index
    %54 = vector.load %arg14[%c0_43, %c0_44, %c0_45] : memref<2x16x16xf32, #tpu.memory_space<vmem>>, vector<2x16x16xf32>
    %55 = vector.shape_cast %54 : vector<2x16x16xf32> to vector<32x16xf32>
    %56 = arith.truncf %55 : vector<32x16xf32> to vector<32x16xbf16>
    %c0_46 = arith.constant 0 : index
    %c0_47 = arith.constant 0 : index
    %57 = vector.load %arg4[%c0_46, %c0_47] : memref<16x4xbf16, #tpu.memory_space<vmem>>, vector<16x4xbf16>
    %cst_48 = arith.constant dense<0.000000e+00> : vector<32x4xf32>
    %58 = tpu.matmul %56, %57, %cst_48 {dimension_numbers = #tpu.dot_dimension_numbers<[1], [0], [0], [1], [0, 0, 1, 1], [], []>} : vector<32x16xbf16>, vector<16x4xbf16>, vector<32x4xf32> -> vector<32x4xf32>
    %c0_49 = arith.constant 0 : index
    %c0_50 = arith.constant 0 : index
    %59 = vector.load %arg7[%c0_49, %c0_50] : memref<1x4xf32, #tpu.memory_space<vmem>>, vector<1x4xf32>
    %60 = vector.broadcast %59 : vector<1x4xf32> to vector<32x4xf32>
    %61 = arith.mulf %58, %60 : vector<32x4xf32>
    %c0_51 = arith.constant 0 : index
    %c0_52 = arith.constant 0 : index
    %62 = vector.load %arg8[%c0_51, %c0_52] : memref<1x4xf32, #tpu.memory_space<vmem>>, vector<1x4xf32>
    %63 = vector.broadcast %62 : vector<1x4xf32> to vector<32x4xf32>
    %64 = arith.addf %61, %63 : vector<32x4xf32>
    %cst_53 = arith.constant 0.000000e+00 : f32
    %65 = vector.broadcast %cst_53 : f32 to vector<32x4xf32>
    %66 = arith.maximumf %64, %65 : vector<32x4xf32>
    %67 = vector.shape_cast %66 : vector<32x4xf32> to vector<2x16x4xf32>
    %68 = tpu.iota {dimensions = array<i32: 1>} : vector<2x16x4xi32>
    %c0_i32_54 = arith.constant 0 : i32
    %69 = vector.broadcast %c0_i32_54 : i32 to vector<2x16x4xi32>
    %70 = arith.cmpi eq, %68, %69 : vector<2x16x4xi32>
    %c1_i32_55 = arith.constant 1 : i32
    %71 = tpu.dynamic_rotate %67 by %c1_i32_55 dim 1 : vector<2x16x4xf32>, i32 -> vector<2x16x4xf32>
    %cst_56 = arith.constant 0.000000e+00 : f32
    %72 = vector.broadcast %cst_56 : f32 to vector<2x16x4xf32>
    %73 = arith.select %70, %72, %71 : vector<2x16x4xi1>, vector<2x16x4xf32>
    %c15_i32_57 = arith.constant 15 : i32
    %74 = vector.broadcast %c15_i32_57 : i32 to vector<2x16x4xi32>
    %75 = arith.cmpi eq, %68, %74 : vector<2x16x4xi32>
    %c15_i32_58 = arith.constant 15 : i32
    %76 = tpu.dynamic_rotate %67 by %c15_i32_58 dim 1 : vector<2x16x4xf32>, i32 -> vector<2x16x4xf32>
    %cst_59 = arith.constant 0.000000e+00 : f32
    %77 = vector.broadcast %cst_59 : f32 to vector<2x16x4xf32>
    %78 = arith.select %75, %77, %76 : vector<2x16x4xi1>, vector<2x16x4xf32>
    %79 = tpu.concatenate %73, %67, %78 in 2 : vector<2x16x4xf32>, vector<2x16x4xf32>, vector<2x16x4xf32> -> vector<2x16x12xf32>
    %80 = arith.truncf %79 : vector<2x16x12xf32> to vector<2x16x12xbf16>
    %81 = vector.extract_strided_slice %80 {offsets = [0, 0, 0], sizes = [1, 16, 12], strides = [1, 1, 1]} : vector<2x16x12xbf16> to vector<1x16x12xbf16>
    %c0_60 = arith.constant 0 : index
    %c0_61 = arith.constant 0 : index
    %c0_62 = arith.constant 0 : index
    %82 = vector.load %arg15[%c0_60, %c0_61, %c0_62] : memref<10x16x12xbf16, #tpu.memory_space<vmem>>, vector<1x16x12xbf16>
    tpu.vector_store %arg15[%c0_60, %c0_61, %c0_62], %81 {strides = array<i32>} : memref<10x16x12xbf16, #tpu.memory_space<vmem>>, vector<1x16x12xbf16>,
    %83 = vector.extract_strided_slice %80 {offsets = [1, 0, 0], sizes = [1, 16, 12], strides = [1, 1, 1]} : vector<2x16x12xbf16> to vector<1x16x12xbf16>
    %c9 = arith.constant 9 : index
    %c0_63 = arith.constant 0 : index
    %c0_64 = arith.constant 0 : index
    %84 = vector.load %arg15[%c9, %c0_63, %c0_64] : memref<10x16x12xbf16, #tpu.memory_space<vmem>>, vector<1x16x12xbf16>
    tpu.vector_store %arg15[%c9, %c0_63, %c0_64], %83 {strides = array<i32>} : memref<10x16x12xbf16, #tpu.memory_space<vmem>>, vector<1x16x12xbf16>,
    %c0_i32_65 = arith.constant 0 : i32
    %85 = arith.cmpi eq, %arg1, %c0_i32_65 : i32
    %86 = arith.extui %85 : i1 to i32
    %c0_i32_66 = arith.constant 0 : i32
    %87 = arith.cmpi ne, %86, %c0_i32_66 : i32
    scf.if %87 {
      %cst_101 = arith.constant 0.000000e+00 : bf16
      %125 = vector.broadcast %cst_101 : bf16 to vector<1x16x12xbf16>
      %c0_102 = arith.constant 0 : index
      %c0_103 = arith.constant 0 : index
      %c0_104 = arith.constant 0 : index
      %126 = vector.load %arg15[%c0_102, %c0_103, %c0_104] : memref<10x16x12xbf16, #tpu.memory_space<vmem>>, vector<1x16x12xbf16>
      tpu.vector_store %arg15[%c0_102, %c0_103, %c0_104], %125 {strides = array<i32>} : memref<10x16x12xbf16, #tpu.memory_space<vmem>>, vector<1x16x12xbf16>,
    } else {
    }
    %c1_i32_67 = arith.constant 1 : i32
    %88 = arith.cmpi eq, %arg1, %c1_i32_67 : i32
    %89 = arith.extui %88 : i1 to i32
    %c0_i32_68 = arith.constant 0 : i32
    %90 = arith.cmpi ne, %89, %c0_i32_68 : i32
    scf.if %90 {
      %cst_101 = arith.constant 0.000000e+00 : bf16
      %125 = vector.broadcast %cst_101 : bf16 to vector<1x16x12xbf16>
      %c9_102 = arith.constant 9 : index
      %c0_103 = arith.constant 0 : index
      %c0_104 = arith.constant 0 : index
      %126 = vector.load %arg15[%c9_102, %c0_103, %c0_104] : memref<10x16x12xbf16, #tpu.memory_space<vmem>>, vector<1x16x12xbf16>
      tpu.vector_store %arg15[%c9_102, %c0_103, %c0_104], %125 {strides = array<i32>} : memref<10x16x12xbf16, #tpu.memory_space<vmem>>, vector<1x16x12xbf16>,
    } else {
    }
    %c0_69 = arith.constant 0 : index
    %c0_70 = arith.constant 0 : index
    %c0_71 = arith.constant 0 : index
    %91 = vector.load %arg15[%c0_69, %c0_70, %c0_71] : memref<10x16x12xbf16, #tpu.memory_space<vmem>>, vector<8x16x12xbf16>
    %c1_72 = arith.constant 1 : index
    %c0_73 = arith.constant 0 : index
    %c0_74 = arith.constant 0 : index
    %92 = vector.load %arg15[%c1_72, %c0_73, %c0_74] : memref<10x16x12xbf16, #tpu.memory_space<vmem>>, vector<8x16x12xbf16>
    %c2 = arith.constant 2 : index
    %c0_75 = arith.constant 0 : index
    %c0_76 = arith.constant 0 : index
    %93 = vector.load %arg15[%c2, %c0_75, %c0_76] : memref<10x16x12xbf16, #tpu.memory_space<vmem>>, vector<8x16x12xbf16>
    %94 = tpu.concatenate %91, %92, %93 in 2 : vector<8x16x12xbf16>, vector<8x16x12xbf16>, vector<8x16x12xbf16> -> vector<8x16x36xbf16>
    %95 = vector.shape_cast %94 : vector<8x16x36xbf16> to vector<128x36xbf16>
    %c0_77 = arith.constant 0 : index
    %c0_78 = arith.constant 0 : index
    %96 = vector.load %arg5[%c0_77, %c0_78] : memref<36x4xbf16, #tpu.memory_space<vmem>>, vector<36x4xbf16>
    %cst_79 = arith.constant dense<0.000000e+00> : vector<128x4xf32>
    %97 = tpu.matmul %95, %96, %cst_79 {dimension_numbers = #tpu.dot_dimension_numbers<[1], [0], [0], [1], [0, 0, 1, 1], [], []>} : vector<128x36xbf16>, vector<36x4xbf16>, vector<128x4xf32> -> vector<128x4xf32>
    %c0_80 = arith.constant 0 : index
    %c0_81 = arith.constant 0 : index
    %98 = vector.load %arg9[%c0_80, %c0_81] : memref<1x4xf32, #tpu.memory_space<vmem>>, vector<1x4xf32>
    %99 = vector.broadcast %98 : vector<1x4xf32> to vector<128x4xf32>
    %100 = arith.mulf %97, %99 : vector<128x4xf32>
    %c0_82 = arith.constant 0 : index
    %c0_83 = arith.constant 0 : index
    %101 = vector.load %arg10[%c0_82, %c0_83] : memref<1x4xf32, #tpu.memory_space<vmem>>, vector<1x4xf32>
    %102 = vector.broadcast %101 : vector<1x4xf32> to vector<128x4xf32>
    %103 = arith.addf %100, %102 : vector<128x4xf32>
    %cst_84 = arith.constant 0.000000e+00 : f32
    %104 = vector.broadcast %cst_84 : f32 to vector<128x4xf32>
    %105 = arith.maximumf %103, %104 : vector<128x4xf32>
    %106 = arith.truncf %105 : vector<128x4xf32> to vector<128x4xbf16>
    %c0_85 = arith.constant 0 : index
    %c0_86 = arith.constant 0 : index
    %107 = vector.load %arg6[%c0_85, %c0_86] : memref<4x16xbf16, #tpu.memory_space<vmem>>, vector<4x16xbf16>
    %cst_87 = arith.constant dense<0.000000e+00> : vector<128x16xf32>
    %108 = tpu.matmul %106, %107, %cst_87 {dimension_numbers = #tpu.dot_dimension_numbers<[1], [0], [0], [1], [0, 0, 1, 1], [], []>} : vector<128x4xbf16>, vector<4x16xbf16>, vector<128x16xf32> -> vector<128x16xf32>
    %c0_88 = arith.constant 0 : index
    %c0_89 = arith.constant 0 : index
    %109 = vector.load %arg11[%c0_88, %c0_89] : memref<1x16xf32, #tpu.memory_space<vmem>>, vector<1x16xf32>
    %110 = vector.broadcast %109 : vector<1x16xf32> to vector<128x16xf32>
    %111 = arith.mulf %108, %110 : vector<128x16xf32>
    %c0_90 = arith.constant 0 : index
    %c0_91 = arith.constant 0 : index
    %112 = vector.load %arg12[%c0_90, %c0_91] : memref<1x16xf32, #tpu.memory_space<vmem>>, vector<1x16xf32>
    %113 = vector.broadcast %112 : vector<1x16xf32> to vector<128x16xf32>
    %114 = arith.addf %111, %113 : vector<128x16xf32>
    %c0_92 = arith.constant 0 : index
    %c0_93 = arith.constant 0 : index
    %c0_94 = arith.constant 0 : index
    %c0_95 = arith.constant 0 : index
    %115 = vector.load %arg2[%c0_92, %c0_93, %c0_94, %c0_95] : memref<1x8x16x16xf32, #tpu.memory_space<vmem>>, vector<1x8x16x16xf32>
    %116 = vector.shape_cast %115 : vector<1x8x16x16xf32> to vector<8x16x16xf32>
    %117 = vector.shape_cast %116 : vector<8x16x16xf32> to vector<128x16xf32>
    %118 = arith.addf %114, %117 : vector<128x16xf32>
    %cst_96 = arith.constant 0.000000e+00 : f32
    %119 = vector.broadcast %cst_96 : f32 to vector<128x16xf32>
    %120 = arith.maximumf %118, %119 : vector<128x16xf32>
    %121 = vector.shape_cast %120 : vector<128x16xf32> to vector<8x16x16xf32>
    %c0_97 = arith.constant 0 : index
    %c0_98 = arith.constant 0 : index
    %c0_99 = arith.constant 0 : index
    %c0_100 = arith.constant 0 : index
    %122 = vector.load %arg13[%c0_97, %c0_98, %c0_99, %c0_100] : memref<1x8x16x16xf32, #tpu.memory_space<vmem>>, vector<1x8x16x16xf32>
    %123 = vector.shape_cast %122 : vector<1x8x16x16xf32> to vector<8x16x16xf32>
    %124 = vector.shape_cast %121 : vector<8x16x16xf32> to vector<1x8x16x16xf32>
    tpu.vector_store %arg13[%c0_97, %c0_98, %c0_99, %c0_100], %124 {strides = array<i32>} : memref<1x8x16x16xf32, #tpu.memory_space<vmem>>, vector<1x8x16x16xf32>,
    return
  }
  func.func @transform_0(%arg0: i32, %arg1: i32) -> (i32, i32, i32, i32) {
    %c0_i32 = arith.constant 0 : i32
    %c0_i32_0 = arith.constant 0 : i32
    %c0_i32_1 = arith.constant 0 : i32
    return %arg0, %arg1, %c0_i32, %c0_i32_0 : i32, i32, i32, i32
  }
  func.func @transform_2(%arg0: i32, %arg1: i32) -> (i32, i32) {
    %c0_i32 = arith.constant 0 : i32
    %c0_i32_0 = arith.constant 0 : i32
    %c0_i32_1 = arith.constant 0 : i32
    return %c0_i32, %c0_i32_0 : i32, i32
  }
  func.func @transform_3(%arg0: i32, %arg1: i32) -> (i32, i32) {
    %c0_i32 = arith.constant 0 : i32
    %c0_i32_0 = arith.constant 0 : i32
    %c0_i32_1 = arith.constant 0 : i32
    return %c0_i32, %c0_i32_0 : i32, i32
  }
  func.func @transform_4(%arg0: i32, %arg1: i32) -> (i32, i32) {
    %c0_i32 = arith.constant 0 : i32
    %c0_i32_0 = arith.constant 0 : i32
    %c0_i32_1 = arith.constant 0 : i32
    return %c0_i32, %c0_i32_0 : i32, i32
  }
  func.func @transform_5(%arg0: i32, %arg1: i32) -> (i32, i32) {
    %c0_i32 = arith.constant 0 : i32
    %c0_i32_0 = arith.constant 0 : i32
    %c0_i32_1 = arith.constant 0 : i32
    return %c0_i32, %c0_i32_0 : i32, i32
  }
  func.func @transform_6(%arg0: i32, %arg1: i32) -> (i32, i32) {
    %c0_i32 = arith.constant 0 : i32
    %c0_i32_0 = arith.constant 0 : i32
    %c0_i32_1 = arith.constant 0 : i32
    return %c0_i32, %c0_i32_0 : i32, i32
  }
  func.func @transform_7(%arg0: i32, %arg1: i32) -> (i32, i32) {
    %c0_i32 = arith.constant 0 : i32
    %c0_i32_0 = arith.constant 0 : i32
    %c0_i32_1 = arith.constant 0 : i32
    return %c0_i32, %c0_i32_0 : i32, i32
  }
  func.func @transform_8(%arg0: i32, %arg1: i32) -> (i32, i32) {
    %c0_i32 = arith.constant 0 : i32
    %c0_i32_0 = arith.constant 0 : i32
    %c0_i32_1 = arith.constant 0 : i32
    return %c0_i32, %c0_i32_0 : i32, i32
  }
  func.func @transform_9(%arg0: i32, %arg1: i32) -> (i32, i32) {
    %c0_i32 = arith.constant 0 : i32
    %c0_i32_0 = arith.constant 0 : i32
    %c0_i32_1 = arith.constant 0 : i32
    return %c0_i32, %c0_i32_0 : i32, i32
  }
  func.func @transform_10(%arg0: i32, %arg1: i32) -> (i32, i32) {
    %c0_i32 = arith.constant 0 : i32
    %c0_i32_0 = arith.constant 0 : i32
    %c0_i32_1 = arith.constant 0 : i32
    return %c0_i32, %c0_i32_0 : i32, i32
  }
  func.func @transform_11(%arg0: i32, %arg1: i32) -> (i32, i32, i32, i32) {
    %c0_i32 = arith.constant 0 : i32
    %c0_i32_0 = arith.constant 0 : i32
    %c0_i32_1 = arith.constant 0 : i32
    return %arg0, %arg1, %c0_i32, %c0_i32_0 : i32, i32, i32, i32
  }
}

</mosaic_0001>

<bundles_post_ra>
// kernel: tpu_custom_call.1
= control target key start
LH: loop header
LB: loop body
LE: loop exit
PB: predicated region body
PF: predicated region fallthrough
CT: control target
= control target key end

     0   :  { %s3339_s0 = inlined_call_operand.hbm [shape: f32[2,16,16,16], index: 0, kind: input, shape index: {}]   ;;  %s3340_s1 = inlined_call_operand.hbm [shape: f32[2,16,16,16], index: 1, kind: input, shape index: {}]   ;;  %s3341_s2 = inlined_call_operand.vmem [shape: bf16[16,4], index: 2, kind: input, shape index: {}]   ;;  %s3342_s3 = inlined_call_operand.vmem [shape: bf16[36,4], index: 3, kind: input, shape index: {}]   ;;  %s3343_s4 = inlined_call_operand.vmem [shape: bf16[4,16], index: 4, kind: input, shape index: {}]   ;;  %s3344_s5 = inlined_call_operand.vmem [shape: f32[1,4], index: 5, kind: input, shape index: {}]   ;;  %s3345_s6 = inlined_call_operand.vmem [shape: f32[1,4], index: 6, kind: input, shape index: {}]   ;;  %s3346_s7 = inlined_call_operand.vmem [shape: f32[1,4], index: 7, kind: input, shape index: {}]   ;;  %s3347_s8 = inlined_call_operand.vmem [shape: f32[1,4], index: 8, kind: input, shape index: {}]   ;;  %s3348_s9 = inlined_call_operand.vmem [shape: f32[1,16], index: 9, kind: input, shape index: {}]   ;;  %s3349_s10 = inlined_call_operand.vmem [shape: f32[1,16], index: 10, kind: input, shape index: {}]   ;;  %s3350_s11 = inlined_call_operand.hbm [shape: f32[2,16,16,16], index: 11, kind: output, shape index: {}]  }
   0x1   :  { %3362 = sst [smem:[#allocation26_spill]] %s3339_s0 }
   0x2   :  { %3363 = sst [smem:[#allocation27_spill]] %s3343_s4 }
   0x3   :  { %3364 = sst [smem:[#allocation28_spill]] %s3346_s7 }
   0x4   :  { %3365 = sst [smem:[#allocation29_spill]] %s3347_s8 }
   0x5   :  { %3366 = sst [smem:[#allocation30_spill]] %s3348_s9 }
   0x6   :  { %3367 = sst [smem:[#allocation31_spill]] %s3349_s10 }
   0x7   :  { %3368 = sst [smem:[#allocation32_spill]] %s3350_s11 }
   0x8   :  { %16 = vsyncpa [#allocation6], 0 }
   0x9   :  { %18 = vsyncpa [#allocation6 + $0x1], 0 }
   0xa   :  { %19 = vsyncpa [#allocation7], 0 }
   0xb   :  { %21 = vsyncpa [#allocation7 + $0x1], 0  ;;  %s2429_s17 = smov 0   ;;  %s2431_s18 = smov 0  }
   0xc   :  { %s2433_s19 = smov 0   ;;  %s2435_s20 = smov 0  }
   0xd   :  { %s2437_s21 = smov 0   ;;  %s2439_s22 = smov 0  }
   0xe   :  { %s2441_s23 = smov 0   ;;  %s2443_s24 = smov 0  }
   0xf LB: > { %3369 = sst [smem:[#allocation19_spill]] %s2326_s17  ;;  %s1809_s25 = sadd.s32 4294967295, %s2354_s24   ;;  %s2354_s24 = sphi %s2443_s24, %s27_s24   ;;  %s2350_s23 = sphi %s2441_s23, %s3398_s23   ;;  %s2346_s22 = sphi %s2439_s22, %s3397_s22   ;;  %s2342_s21 = sphi %s2437_s21, %s3396_s21   ;;  %s2338_s20 = sphi %s2435_s20, %s3395_s20   ;;  %s2334_s19 = sphi %s2433_s19, %s3394_s19   ;;  %s2330_s18 = sphi %s2431_s18, %s3400_s18   ;;  %s2326_s17 = sphi %s2429_s17, %s3399_s17  }
  0x10   : > { %3370 = sst [smem:[#allocation20_spill]] %s2334_s19  ;;  %s1810_s26 = sadd.s32 4294967294, %s2354_s24  }
  0x11   : > { %3371 = sst [smem:[#allocation21_spill]] %s2346_s22  ;;  %s36_s27 = sadd.s32 1, %s2346_s22 }
  0x12   : > { %3372 = sst [smem:[#allocation22_spill]] %s2350_s23  ;;  %s39_s28 = sadd.s32 1, %s2350_s23 }
  0x13   : > { %p37_p0 = scmp.ge.s32.totalorder %s36_s27, 2  ;;  %s48_s29 = sadd.s32 1, %s2334_s19 }
  0x14   : > { %p55_p1 = scmp.ne.s32.totalorder %s2334_s19, %s2330_s18  ;;  %p56_p2 = scmp.eq.s32.totalorder %s2354_s24, 0 }
  0x15   : > { %s3402_s27 = smov (%p37_p0, %s36_s27), 0  ;;  %s3404_s28 = smov (!%p37_p0, %s39_s28), %s2350_s23 }
  0x16   : > { %3373 = sst [smem:[#allocation23_spill]] %s3402_s27  ;;  %s44_s30 = ssub.s32 %s2346_s22, %s3402_s27 }
  0x17   : > { %p2482_p3 = por %p56_p2, %p55_p1  ;;  %p41_p4 = scmp.ge.s32.totalorder %s3404_s28, 2 }
  0x18   : > { %p61_p5 = scmp.ne.s32.totalorder %s2330_s18, %s2326_s17  ;;  %p62_p6 = scmp.eq.s32.totalorder %s1809_s25, 0 }
  0x19   : > { %p276_p7 = scmp.eq.s32.totalorder %s1809_s25, 3  ;;  %s3406_s28 = smov (%p41_p4, %s3404_s28), 0 }
  0x1a   : > { %3375 = sst [smem:[#allocation24_spill]] %s3406_s28  ;;  %p2490_p8 = por %p62_p6, %p61_p5 }
  0x1b   : > { %p2494_p9 = por %p276_p7, %p55_p1  ;;  %s43_s15 = ssub.s32 %s2350_s23, %s3406_s28 }
  0x1c   : > { %p282_p10 = scmp.eq.s32.totalorder %s1810_s26, 3  ;;  %s45_s16 = sor.u32 %s44_s30, %s43_s15 }
  0x1d   : > { %s3377_s14 = scalar_select %p2494_p9, 1, 0 }
  0x1e   : > { %p46_p11 = scmp.eq.s32.totalorder %s45_s16, 0  ;;  %p2500_p12 = por %p282_p10, %p61_p5 }
  0x1f   : > { %p1992_p13 = scmp.lt.s32.totalorder %s2354_s24, 4  ;;  %s329_s25 = sand.u32 1, %s2334_s19  }
  0x20   : > { %s3378_s27 = scalar_select %p2500_p12, 1, 0 }
  0x21   : > { %s2507_s17 = scalar_select %p46_p11, %s2334_s19, %s48_s29  }
  0x22   : > { %s1813_s11 = sshll.u32 %s329_s25, 7  ;;  %s1878_s10 = sshll.u32 %s2346_s22, 4 }
  0x23   : > { %3379 = sst [smem:[#allocation25_spill]] %s2507_s17  ;;  %s1816_s9 = sshll.u32 %s2350_s23, 5 }
  0x24   : > { %s333_s8 = scalar_lea.vmem [#allocation5], %s1813_s11  ;;  %s340_s4 = sadd.s32 %s1878_s10, %s1816_s9 }
  0x25   : > { %s343_s7 = sshll.u32 %s333_s8, 4  ;;  %s1817_s28 = sshll.u32 %s340_s4, 7  ;;  %s2511_s7 = int_to_ptr.vmem [resolvable:$true] %s343_s7 }
  0x26   : > { %p2515_p0 = pnand %p1992_p13, %p2482_p3  ;;  %s3381_s0 = sld [smem:[#allocation26_spill]] }
  0x27   : > { %s2524_s8 = scalar_lea.sflag [#allocation6], %s329_s25 }
  0x28   : > { %p2176_p2 = pneg %p2515_p0 }
  0x2c   : > { %s2522_s29 = scalar_lea.hbm %s3381_s0, %s1817_s28  ;;  %s2179_s11 = scalar_lea.hbm %s3381_s0, 8192 }
  0x2d   : > { %s2174_s9 = scalar_lea.hbm %s2522_s29, 2048  ;;  %p2180_p5 = scmp.lt.u32.totalorder %s2522_s29, %s3381_s0 }
  0x2e   : > { %p2175_p1 = scmp.ne.s32.totalorder %s2522_s29, %s2174_s9  ;;  %p2181_p6 = scmp.lt.u32.totalorder %s2179_s11, %s2174_s9 }
  0x2f   : > { %p2183_p10 = scmp.lt.u32.totalorder %s2174_s9, %s2522_s29 }
  0x30   : > { %p2177_p3 = pnand %p2176_p2, %p2175_p1  ;;  %p2182_p7 = por %p2181_p6, %p2180_p5 }
  0x32   : > { %p2178_p4 = pneg %p2177_p3  ;;  %p2184_p11 = por %p2183_p10, %p2182_p7 }
  0x34   : > { %p2185_p13 = pnand %p2184_p11, %p2178_p4 }
  0x36   : > { %2188 = shalt.err (!%p2185_p13)
}
  0x37   : > { %s2189_s16 = scalar_lea.vmem %s2511_s7, 2048  ;;  %s2356_s25 = smov [#allocation5]  }
  0x38   : > { %p2190_p1 = scmp.ne.s32.totalorder %s2511_s7, %s2189_s16  ;;  %s2194_s30 = sshll.u32 %s2356_s25, 4  ;;  %s2195_s30 = int_to_ptr.vmem [resolvable:$false] %s2194_s30 }
  0x39   : > { %s2196_s15 = scalar_lea.vmem %s2195_s30, 4096  ;;  %p2197_p9 = scmp.lt.s32.totalorder %s2511_s7, %s2195_s30 }
  0x3a   : > { %p2192_p3 = pnand %p2190_p1, %p2176_p2  ;;  %p2198_p5 = scmp.lt.s32.totalorder %s2196_s15, %s2189_s16 }
  0x3c   : > { %p2193_p12 = pneg %p2192_p3  ;;  %p2199_p6 = por %p2198_p5, %p2197_p9 }
  0x3e   : > { %p2200_p7 = pnand %p2199_p6, %p2193_p12 }
  0x40   : > { %2203 = shalt.err (!%p2200_p7)
}
  0x41   : > { %s2357_s9 = smov 128   ;;  %s2358_s4 = smov 8  }
  0x42   : > { %1987 = dma.hbm_to_vmem [thread:$0]  (!%p2515_p0), %s2522_s29, 2048, %s2511_s7, %s2524_s8, %s2357_s9, %s2357_s9, %s2358_s4  }
  0x43   : > { %p1818_p2 = scmp.ge.s32.totalorder %s2354_s24, 1  ;;  %p351_p4 = scmp.lt.s32.totalorder %s2354_s24, 5 }
  0x45   : > { %p352_p10 = pnand %p1818_p2, %p351_p4 }
  0x46   : > { %s2555_s10 = sand.u32 (!%p352_p10), 1, %s2330_s18  }
  0x47   : > { %355 = sbr.rel (%p352_p10) target bundleno = 1437 (0x59d), region = 60  ;;  %s3358_s11 = sshll.u32 (!%p352_p10), %s2555_s10, 7 }
  0x48   : > { %s358_s28 = scalar_lea.sflag (!%p352_p10), [#allocation6], %s2555_s10  ;;  %s2561_s12 = scalar_lea.vmem (!%p352_p10), [#allocation5], %s3358_s11 }
  0x4e   : > { %2313 = dma.done.wait (%p2490_p8), %s358_s28, 2048  }
  0x4f   : > { %2315 = vsyncadd (%p2490_p8), %s358_s28, 4294965248  ;;  %v2149_v0 = vld [vmem:[%s3341_s2] sm:$0xff]   ;;  %v441_v1 = vld [vmem:[%s2561_s12] sm:$0xff]  ;;  %vm473_vm0 = vcmask 130048   ;;  %v657_v25 = vlaneseq  ;;  %s3356_s25 = smov 4   ;;  %s2360_s30 = smov 8  }
  0x50   : > { %v442_v2 = vld [vmem:[%s2561_s12 + $0x8] sm:$0xff]  ;;  %v453_v3 = vld [vmem:[%s2561_s12 + $0x60] sm:$0xff]  ;;  %1912 = vmatprep.subr.bf16.mxu0 %v2149_v0  ;;  %1976 = vmatprep.subr.bf16.mxu1 %v2149_v0  ;;  %v443_v6 = vld [vmem:[%s2561_s12 + $0x10] sm:$0xff]  ;;  %s1821_s15 = sshll.u32 %s2338_s20, 3  ;;  %s1824_s4 = sshll.u32 %s2342_s21, 8 }
  0x51   : > { %v457_v4 = vpack.c.bf16 %v442_v2, %v441_v1  ;;  %v454_v5 = vld [vmem:[%s2561_s12 + $0x68] sm:$0xff]  ;;  %v444_v7 = vld [vmem:[%s2561_s12 + $0x18] sm:$0xff]  ;;  %1913 = vmatpush3.bf16.msra.mxu0 %v2149_v0  ;;  %1977 = vmatpush3.bf16.msra.mxu1 %v2149_v0  ;;  %v455_v10 = vld [vmem:[%s2561_s12 + $0x70] sm:$0xff]  ;;  %v2599_v27 = vshrl.u32 %v657_v25, 7  ;;  %s1822_s9 = sadd.s32 4294967295, %s1821_s15  ;;  %s2361_s28 = smov [#allocation2]  }
  0x52   : > { %v463_v8 = vpack.c.bf16 %v454_v5, %v453_v3  ;;  %v458_v9 = vpack.c.bf16 %v444_v7, %v443_v6  ;;  %v456_v11 = vld [vmem:[%s2561_s12 + $0x78] sm:$0xff]  ;;  %v445_v12 = vld [vmem:[%s2561_s12 + $0x20] sm:$0xff]  ;;  %v446_v14 = vld [vmem:[%s2561_s12 + $0x28] sm:$0xff]  ;;  %p403_p8 = scmp.gt.s32.totalorder %s1822_s9, 0  ;;  %s420_s7 = sshll.u32 %s2361_s28, 4  ;;  %s2933_s7 = int_to_ptr.vmem [resolvable:$true] %s420_s7 }
  0x53   : > { %1914 = vmatprep.mubr.msk.bf16.mxu0 %vm473_vm0, %v457_v4  ;;  %v464_v13 = vpack.c.bf16 %v456_v11, %v455_v10  ;;  %v459_v15 = vpack.c.bf16 %v446_v14, %v445_v12  ;;  %v447_v16 = vld [vmem:[%s2561_s12 + $0x30] sm:$0xff]  ;;  %v448_v17 = vld [vmem:[%s2561_s12 + $0x38] sm:$0xff]  ;;  %v449_v18 = vld [vmem:[%s2561_s12 + $0x40] sm:$0xff]  ;;  %v2611_v39 = vadd.s32 8, %v2599_v27  ;;  %vm729_vm2 = vcmp.lt.s32.totalorder %v2599_v27, 7  ;;  %s2930_s26 = sadd.s32 8, %s1821_s15 }
  0x54   : > { %1926 = vmatprep.mubr.msk.bf16.mxu1 %vm473_vm0, %v463_v8  ;;  %1915 = vmatmul.mubr.msk.bf16.vlgmr.msra.gmra.mrb[0].mxu0 %vm473_vm0, %v458_v9  ;;  %v450_v19 = vld [vmem:[%s2561_s12 + $0x48] sm:$0xff]  ;;  %v460_v20 = vpack.c.bf16 %v448_v17, %v447_v16  ;;  %v451_v22 = vld [vmem:[%s2561_s12 + $0x50] sm:$0xff]  ;;  %v452_v23 = vld [vmem:[%s2561_s12 + $0x58] sm:$0xff]  ;;  %vm678_vm3 = vcmp.lt.s32.totalorder %v2599_v27, 1  ;;  %vm660_vm4 = vcmp.eq.s32.totalorder %v2599_v27, 0  ;;  %s3408_s9 = smov (!%p403_p8, %s1822_s9), 0 }
  0x55   : > { %1927 = vmatmul.mubr.msk.bf16.vlgmr.msra.gmra.mrb[0].mxu1 %vm473_vm0, %v464_v13  ;;  %1918 = vmatprep.mubr.msk.bf16.mxu0 %vm473_vm0, %v459_v15  ;;  %v461_v21 = vpack.c.bf16 %v450_v19, %v449_v18  ;;  %v462_v24 = vpack.c.bf16 %v452_v23, %v451_v22  ;;  %v2597_v26 = vld [vmem:[%s3344_s5] ss:$0 sm:$0xff]  ;;  %vm712_vm1 = vcmp.eq.s32.totalorder %v2611_v39, 15  ;;  %s1823_s13 = sshll.u32 %s3408_s9, 4  ;;  %p406_p9 = scmp.lt.s32.totalorder %s2930_s26, 15 }
  0x56   : > { %v2604_v29 = vld [vmem:[%s3345_s6] ss:$0 sm:$0xff]  ;;  %s410_s29 = sadd.s32 %s1824_s4, %s1823_s13  ;;  %s2362_s28 = smov [#allocation2 + $0x10]  }
  0x57   : > { %s1825_s8 = sshll.u32 %s410_s29, 4  ;;  %s437_s11 = sshll.u32 %s2362_s28, 4  ;;  %s438_s11 = int_to_ptr.vmem [resolvable:$true] %s437_s11 }
  0x58   : > { %s412_s15 = scalar_lea.hbm %s3340_s1, %s1825_s8  ;;  %s2206_s9 = scalar_lea.hbm %s3340_s1, 8192 }
  0x59   : > { %s2204_s0 = scalar_lea.hbm %s412_s15, 256  ;;  %p2207_p0 = scmp.lt.u32.totalorder %s412_s15, %s3340_s1 }
  0x5a   : > { %p2205_p12 = scmp.ne.s32.totalorder %s412_s15, %s2204_s0  ;;  %p2208_p11 = scmp.lt.u32.totalorder %s2206_s9, %s2204_s0 }
  0x5b   : > { %p2210_p1 = scmp.lt.u32.totalorder %s2204_s0, %s412_s15 }
  0x5c   : > { %1919 = vmatmul.mubr.msk.bf16.gmra.mrb[4].mxu0 %vm473_vm0, %v460_v20  ;;  %p2209_p13 = por %p2208_p11, %p2207_p0 }
  0x5d   : > { %1922 = vmatprep.mubr.msk.bf16.mxu0 %vm473_vm0, %v461_v21 }
  0x5e   : > { %p2211_p3 = por %p2210_p1, %p2209_p13 }
  0x60   : > { %p2212_p5 = pnand %p2211_p3, %p2205_p12 }
  0x64   : > { %1923 = vmatmul.mubr.msk.bf16.gmra.mrb[8].mxu0 %vm473_vm0, %v462_v24 }
 0x127   : > { %v1916_v28 = vpop.f32.mrb[0].mxu0 }
 0x128   : > { %v1928_v30 = vpop.f32.mrb[0].mxu1  ;;  %v604_v31 = vmul.f32 %v1916_v28, %v2597_v26  ;;  %v532_v33 = vpop.f32.mrb[1].mxu0 }
 0x129   : > { %v616_v32 = vmul.f32 %v1928_v30, %v2597_v26  ;;  %v580_v34 = vpop.f32.mrb[1].mxu1  ;;  %v602_v35 = vmul.f32 %v2597_v26, %v532_v33  ;;  %v1917_v37 = vpop.f32.mrb[2].mxu0 }
 0x12a   : > { %v614_v36 = vmul.f32 %v2597_v26, %v580_v34  ;;  %v1929_v38 = vpop.f32.mrb[2].mxu1  ;;  %v627_v40 = vadd.f32 %v2604_v29, %v604_v31  ;;  %v605_v42 = vmul.f32 %v1917_v37, %v2597_v26  ;;  %v535_v44 = vpop.f32.mrb[3].mxu0 }
 0x12b   : > { %v639_v41 = vadd.f32 %v2604_v29, %v616_v32  ;;  %v617_v43 = vmul.f32 %v1929_v38, %v2597_v26  ;;  %v583_v45 = vpop.f32.mrb[3].mxu1  ;;  %v625_v46 = vadd.f32 %v2604_v29, %v602_v35  ;;  %v603_v48 = vmul.f32 %v2597_v26, %v535_v44 }
 0x12c   : > { %v637_v47 = vadd.f32 %v2604_v29, %v614_v36  ;;  %v615_v49 = vmul.f32 %v2597_v26, %v583_v45  ;;  %v2621_v50 = vmax.f32 %v627_v40, 0.0  ;;  %v628_v52 = vadd.f32 %v2604_v29, %v605_v42 }
 0x12d   : > { %v2623_v51 = vmax.f32 %v639_v41, 0.0  ;;  %v640_v53 = vadd.f32 %v2604_v29, %v617_v43  ;;  %v2627_v54 = vmax.f32 %v625_v46, 0.0  ;;  %v626_v56 = vadd.f32 %v2604_v29, %v603_v48 }
 0x12e   : > { %v2629_v55 = vmax.f32 %v637_v47, 0.0  ;;  %v638_v57 = vadd.f32 %v2604_v29, %v615_v49  ;;  %v663_v58 = vrot.slane %v2621_v50, 7  ;;  %v714_v59 = vrot.slane %v2621_v50, 1 }
 0x12f   : > { %v669_v60 = vrot.slane %v2623_v51, 7  ;;  %v720_v61 = vrot.slane %v2623_v51, 1  ;;  %v662_v62 = vrot.slane %v2627_v54, 7  ;;  %v713_v63 = vrot.slane %v2627_v54, 1  ;;  %v1920_v0 = vpop.f32.mrb[4].mxu0 }
 0x130   : > { %v2641_v1 = vmax.f32 %v628_v52, 0.0  ;;  %v2643_v2 = vmax.f32 %v640_v53, 0.0  ;;  %v2645_v3 = vmax.f32 %v626_v56, 0.0  ;;  %v2647_v4 = vmax.f32 %v638_v57, 0.0  ;;  %v548_v5 = vpop.f32.mrb[5].mxu0 }
 0x131   : > { %v668_v6 = vrot.slane %v2629_v55, 7  ;;  %v719_v7 = vrot.slane %v2629_v55, 1  ;;  %v608_v8 = vmul.f32 %v1920_v0, %v2597_v26  ;;  %v606_v9 = vmul.f32 %v2597_v26, %v548_v5  ;;  %v1921_v10 = vpop.f32.mrb[6].mxu0 }
 0x132   : > { %v671_v11 = vrot.slane %v2641_v1, 7  ;;  %v722_v12 = vrot.slane %v2641_v1, 1  ;;  %v677_v13 = vrot.slane %v2643_v2, 7  ;;  %v728_v14 = vrot.slane %v2643_v2, 1  ;;  %v551_v15 = vpop.f32.mrb[7].mxu0 }
 0x133   : > { %v670_v16 = vrot.slane %v2645_v3, 7  ;;  %v721_v17 = vrot.slane %v2645_v3, 1  ;;  %v676_v18 = vrot.slane %v2647_v4, 7  ;;  %v727_v19 = vrot.slane %v2647_v4, 1 }
 0x134   : > { %v631_v20 = vadd.f32 %v2604_v29, %v608_v8  ;;  %v629_v21 = vadd.f32 %v2604_v29, %v606_v9  ;;  %v609_v22 = vmul.f32 %v1921_v10, %v2597_v26  ;;  %v2074_v23 = vpack.i.bf16 %v2643_v2, %v2623_v51 }
 0x135   : > { %v2069_v24 = vpack.i.bf16 %v2641_v1, %v2621_v50  ;;  %v607_v25 = vmul.f32 %v2597_v26, %v551_v15  ;;  %v731_v28 = vsel %vm729_vm2, %v714_v59, %v722_v12  ;;  %v739_v30 = vsel %vm729_vm2, %v722_v12, %v714_v59 }
 0x136   : > { %v2673_v31 = vmax.f32 %v631_v20, 0.0  ;;  %v2675_v32 = vmax.f32 %v629_v21, 0.0  ;;  %v632_v33 = vadd.f32 %v2604_v29, %v609_v22  ;;  %2075 = vrot.lane.b32.xlu1 %v2074_v23, %s3356_s25  ;;  %v749_v34 = vsel %vm712_vm1, 0.0, %v739_v30 }
 0x137   : > { %2070 = vrot.lane.b32.xlu0 %v2069_v24, %s3356_s25  ;;  %v630_v35 = vadd.f32 %v2604_v29, %v607_v25  ;;  %v2089_v36 = vpack.i.bf16 %v749_v34, %v731_v28  ;;  %v2079_v37 = vpack.i.bf16 %v2645_v3, %v2627_v54  ;;  %v1924_v38 = vpop.f32.mrb[8].mxu0  ;;  %v2084_v40 = vpack.i.bf16 %v2647_v4, %v2629_v55 }
 0x138   : > { %v665_v41 = vrot.slane %v2673_v31, 7  ;;  %v716_v42 = vrot.slane %v2673_v31, 1  ;;  %v664_v43 = vrot.slane %v2675_v32, 7  ;;  %v715_v44 = vrot.slane %v2675_v32, 1  ;;  %v564_v45 = vpop.f32.mrb[9].mxu0 }
 0x139   : > { %v2691_v46 = vmax.f32 %v632_v33, 0.0  ;;  %v2693_v47 = vmax.f32 %v630_v35, 0.0  ;;  %v612_v48 = vmul.f32 %v1924_v38, %v2597_v26  ;;  %v610_v49 = vmul.f32 %v2597_v26, %v564_v45  ;;  %v1925_v52 = vpop.f32.mrb[10].mxu0 }
 0x13a   : > { %2090 = vrot.lane.b32.xlu1 %v2089_v36, %s2360_s30  ;;  %v613_v53 = vmul.f32 %v1925_v52, %v2597_v26  ;;  %v567_v56 = vpop.f32.mrb[11].mxu0  ;;  %v730_v57 = vsel %vm729_vm2, %v713_v63, %v721_v17  ;;  %v738_v59 = vsel %vm729_vm2, %v721_v17, %v713_v63  ;;  %v2709_v0 = vsel %vm729_vm2, %v720_v61, %v728_v14 }
 0x13b   : > { %v673_v5 = vrot.slane %v2691_v46, 7  ;;  %v724_v8 = vrot.slane %v2691_v46, 1  ;;  %v672_v9 = vrot.slane %v2693_v47, 7  ;;  %v723_v10 = vrot.slane %v2693_v47, 1  ;;  %2080 = vrot.lane.b32.xlu0 %v2079_v37, %s3356_s25 }
 0x13c   : > { %v635_v63 = vadd.f32 %v2604_v29, %v612_v48  ;;  %v633_v12 = vadd.f32 %v2604_v29, %v610_v49  ;;  %v636_v15 = vadd.f32 %v2604_v29, %v613_v53  ;;  %v2099_v17 = vpack.i.bf16 %v2691_v46, %v2673_v31 }
 0x13d   : > { %v611_v20 = vmul.f32 %v2597_v26, %v567_v56  ;;  %v747_v21 = vsel %vm712_vm1, 0.0, %v738_v59  ;;  %v2104_v22 = vpack.i.bf16 %v2693_v47, %v2675_v32  ;;  %v733_v23 = vsel %vm729_vm2, %v716_v42, %v724_v8 }
 0x13e   : > { %v2730_v24 = vmax.f32 %v635_v63, 0.0  ;;  %v2732_v25 = vmax.f32 %v633_v12, 0.0  ;;  %v2734_v28 = vmax.f32 %v636_v15, 0.0  ;;  %2100 = vrot.lane.b32.xlu1 %v2099_v17, %s3356_s25  ;;  %v2094_v26 = vpack.i.bf16 %v747_v21, %v730_v57 }
 0x13f   : > { %2085 = vrot.lane.b32.xlu0 %v2084_v40, %s3356_s25  ;;  %v634_v30 = vadd.f32 %v2604_v29, %v611_v20  ;;  %v741_v33 = vsel %vm729_vm2, %v724_v8, %v716_v42  ;;  %v732_v34 = vsel %vm729_vm2, %v715_v44, %v723_v10  ;;  %v740_v35 = vsel %vm729_vm2, %v723_v10, %v715_v44 }
 0x140   : > { %v667_v36 = vrot.slane %v2730_v24, 7  ;;  %v718_v37 = vrot.slane %v2730_v24, 1  ;;  %v666_v38 = vrot.slane %v2732_v25, 7  ;;  %v717_v45 = vrot.slane %v2732_v25, 1 }
 0x141   : > { %v675_v40 = vrot.slane %v2734_v28, 7  ;;  %v726_v29 = vrot.slane %v2734_v28, 1  ;;  %v650_v48 = vmax.f32 %v634_v30, 0.0  ;;  %v753_v42 = vsel %vm712_vm1, 0.0, %v741_v33 }
 0x142   : > { %2105 = vrot.lane.b32.xlu1 %v2104_v22, %s3356_s25  ;;  %v2109_v49 = vpack.i.bf16 %v753_v42, %v733_v23  ;;  %v751_v44 = vsel %vm712_vm1, 0.0, %v740_v35  ;;  %v2119_v52 = vpack.i.bf16 %v2734_v28, %v2730_v24  ;;  %v745_v53 = vsel %vm729_vm2, %v728_v14, %v720_v61 }
 0x143   : > { %v674_v56 = vrot.slane %v650_v48, 7  ;;  %v725_v57 = vrot.slane %v650_v48, 1  ;;  %2095 = vrot.lane.b32.xlu0 %v2094_v26, %s2360_s30  ;;  %v2114_v59 = vpack.i.bf16 %v751_v44, %v732_v34  ;;  %v2124_v8 = vpack.i.bf16 %v650_v48, %v2732_v25 }
 0x144   : > { %v735_v10 = vsel %vm729_vm2, %v718_v37, %v726_v29  ;;  %v743_v63 = vsel %vm729_vm2, %v726_v29, %v718_v37  ;;  %v761_v12 = vsel %vm712_vm1, 0.0, %v745_v53  ;;  %v736_v61 = vsel %vm729_vm2, %v719_v7, %v727_v19 }
 0x145   : > { %v757_v14 = vsel %vm712_vm1, 0.0, %v743_v63  ;;  %v734_v15 = vsel %vm729_vm2, %v717_v45, %v725_v57  ;;  %v742_v17 = vsel %vm729_vm2, %v725_v57, %v717_v45  ;;  %v2144_v20 = vpack.i.bf16 %v761_v12, %v2709_v0 }
 0x146   : > { %2110 = vrot.lane.b32.xlu1 %v2109_v49, %s2360_s30  ;;  %v2129_v21 = vpack.i.bf16 %v757_v14, %v735_v10  ;;  %v755_v22 = vsel %vm712_vm1, 0.0, %v742_v17  ;;  %v744_v23 = vsel %vm729_vm2, %v727_v19, %v719_v7  ;;  %v2800_v0 = vsel %vm678_vm3, %v669_v60, %v677_v13 }
 0x147   : > { %2115 = vrot.lane.b32.xlu0 %v2114_v59, %s2360_s30  ;;  %v2134_v24 = vpack.i.bf16 %v755_v22, %v734_v15  ;;  %v759_v25 = vsel %vm712_vm1, 0.0, %v744_v23  ;;  %v694_v7 = vsel %vm678_vm3, %v677_v13, %v669_v60  ;;  %v2817_v19 = vsel %vm678_vm3, %v663_v58, %v671_v11 }
 0x148   : > { %v2139_v28 = vpack.i.bf16 %v759_v25, %v736_v61  ;;  %v2821_v26 = vsel %vm660_vm4, 0.0, %v694_v7  ;;  %v688_v51 = vsel %vm678_vm3, %v671_v11, %v663_v58  ;;  %v2835_v60 = vsel %vm678_vm3, %v662_v62, %v670_v16 }
 0x149   : > { %v2839_v2 = vsel %vm660_vm4, 0.0, %v688_v51  ;;  %v687_v50 = vsel %vm678_vm3, %v670_v16, %v662_v62  ;;  %v2853_v58 = vsel %vm678_vm3, %v668_v6, %v676_v18  ;;  %v693_v54 = vsel %vm678_vm3, %v676_v18, %v668_v6 }
 0x14a   : > { %2120 = vrot.lane.b32.xlu1 %v2119_v52, %s3356_s25  ;;  %v2864_v62 = vsel %vm660_vm4, 0.0, %v687_v50  ;;  %v2868_v1 = vsel %vm660_vm4, 0.0, %v693_v54  ;;  %v2876_v55 = vsel %vm678_vm3, %v665_v41, %v673_v5  ;;  %v690_v3 = vsel %vm678_vm3, %v673_v5, %v665_v41 }
 0x14b   : > { %2125 = vrot.lane.b32.xlu0 %v2124_v8, %s3356_s25  ;;  %v2887_v4 = vsel %vm660_vm4, 0.0, %v690_v3  ;;  %v2895_v6 = vsel %vm678_vm3, %v664_v43, %v672_v9  ;;  %v689_v11 = vsel %vm678_vm3, %v672_v9, %v664_v43  ;;  %v2905_v13 = vsel %vm678_vm3, %v667_v36, %v675_v40 }
 0x14c   : > { %v2910_v16 = vsel %vm660_vm4, 0.0, %v689_v11  ;;  %v692_v18 = vsel %vm678_vm3, %v675_v40, %v667_v36  ;;  %v2916_v31 = vsel %vm678_vm3, %v666_v38, %v674_v56  ;;  %v691_v32 = vsel %vm678_vm3, %v674_v56, %v666_v38 }
 0x14d   : > { %v2923_v41 = vsel %vm660_vm4, 0.0, %v692_v18  ;;  %v2927_v43 = vsel %vm660_vm4, 0.0, %v691_v32 }
 0x14e   : > { %2130 = vrot.lane.b32.xlu1 %v2129_v21, %s2360_s30 }
 0x14f   : > { %2135 = vrot.lane.b32.xlu0 %v2134_v24, %s2360_s30 }
 0x152   : > { %2145 = vrot.lane.b32.xlu1 %v2144_v20, %s2360_s30 }
 0x153   : > { %2140 = vrot.lane.b32.xlu0 %v2139_v28, %s2360_s30 }
 0x154   : > { %2215 = shalt.err (!%p2212_p5)  }
 0x155   : > { %s2216_s25 = scalar_lea.vmem %s2933_s7, 256  ;;  %s2220_s13 = scalar_lea.vmem %s2933_s7, 512 }
 0x156   : > { %p2217_p6 = scmp.ne.s32.totalorder %s2933_s7, %s2216_s25  ;;  %p2221_p7 = scmp.lt.s32.totalorder %s2933_s7, %s2933_s7 }
 0x157   : > { %p2222_p2 = scmp.lt.s32.totalorder %s2220_s13, %s2216_s25 }
 0x159   : > { %p2223_p4 = por %p2222_p2, %p2221_p7 }
 0x15b   : > { %p2224_p10 = pnand %p2223_p4, %p2217_p6 }
 0x15d   : > { %2227 = shalt.err (!%p2224_p10)  }
 0x15e   : > { %423 = dma.hbm_to_vmem [thread:$0]  %s412_s15, 256, %s2933_s7, [#allocation4] }
 0x15f   : > { %s3410_s26 = smov (!%p406_p9, %s2930_s26), 15 }
 0x160   : > { %s1826_s0 = sshll.u32 %s3410_s26, 4 }
 0x161   : > { %s425_s17 = sadd.s32 %s1826_s0, %s1824_s4 }
 0x162   : > { %s1827_s19 = sshll.u32 %s425_s17, 4 }
 0x163   : > { %s427_s29 = scalar_lea.hbm %s3340_s1, %s1827_s19 }
 0x164   : > { %s2228_s8 = scalar_lea.hbm %s427_s29, 256  ;;  %p2231_p12 = scmp.lt.u32.totalorder %s427_s29, %s3340_s1 }
 0x165   : > { %p2229_p8 = scmp.ne.s32.totalorder %s427_s29, %s2228_s8  ;;  %p2232_p0 = scmp.lt.u32.totalorder %s2206_s9, %s2228_s8 }
 0x166   : > { %p2234_p13 = scmp.lt.u32.totalorder %s2228_s8, %s427_s29 }
 0x167   : > { %p2233_p11 = por %p2232_p0, %p2231_p12 }
 0x169   : > { %p2235_p1 = por %p2234_p13, %p2233_p11 }
 0x16b   : > { %p2236_p9 = pnand %p2235_p1, %p2229_p8 }
 0x16d   : > { %2239 = shalt.err (!%p2236_p9)  }
 0x16e   : > { %s2240_s26 = scalar_lea.vmem %s438_s11, 256  ;;  %p2245_p5 = scmp.lt.s32.totalorder %s438_s11, %s2933_s7 }
 0x16f   : > { %p2241_p3 = scmp.ne.s32.totalorder %s438_s11, %s2240_s26  ;;  %p2246_p6 = scmp.lt.s32.totalorder %s2220_s13, %s2240_s26 }
 0x171   : > { %p2247_p7 = por %p2246_p6, %p2245_p5 }
 0x173   : > { %p2248_p2 = pnand %p2247_p7, %p2241_p3 }
 0x175   : > { %2251 = shalt.err (!%p2248_p2)  }
 0x176   : > { %440 = dma.hbm_to_vmem [thread:$0]  %s427_s29, 256, %s438_s11, [#allocation4 + $0x1]  ;;  %vm890_vm5 = vcmask 31744   ;;  %vm907_vm6 = vcmask 64512   ;;  %vm933_vm7 = vcmask 97280  }
 0x177   : > { %s3382_s11 = sshll.u32 %s2555_s10, 7 }
 0x178   : > { %s3033_s4 = scalar_lea.vmem [#allocation8], %s3382_s11 }
 0x1a8   : > { %v2967_v46 = vpop.permute.xlu1 %2075 }
 0x1a9   : > { %v2071_v47 = vpop.permute.xlu0 %2070  ;;  %v2078_v18 = vunpack.i.h.bf16 %v2967_v46  ;;  %v2077_v32 = vunpack.i.l.bf16 %v2967_v46 }
 0x1aa   : > { %v2073_v5 = vunpack.i.h.bf16 %v2071_v47  ;;  %v2072_v9 = vunpack.i.l.bf16 %v2071_v47 }
 0x1ac   : > { %v2091_v30 = vpop.permute.xlu1 %2090  ;;  %v893_v36 = vsel %vm890_vm5, %v2839_v2, %v2072_v9  ;;  %v894_v37 = vsel %vm890_vm5, %v2817_v19, %v2073_v5 }
 0x1ad   : > { %v2093_v33 = vunpack.i.h.bf16 %v2091_v30  ;;  %v2092_v34 = vunpack.i.l.bf16 %v2091_v30  ;;  %v2081_v35 = vpop.permute.xlu0 %2080 }
 0x1ae   : > { %v2083_v42 = vunpack.i.h.bf16 %v2081_v35  ;;  %v2082_v49 = vunpack.i.l.bf16 %v2081_v35 }
 0x1af   : > { %v910_v38 = vsel %vm907_vm6, %v893_v36, %v2092_v34  ;;  %v911_v45 = vsel %vm907_vm6, %v894_v37, %v2093_v33 }
 0x1b0   : > { %v925_v40 = vpack.c.bf16 %v911_v45, %v910_v38  ;;  %v2101_v29 = vpop.permute.xlu1 %2100  ;;  %v891_v8 = vsel %vm890_vm5, %v2864_v62, %v2082_v49  ;;  %v892_v10 = vsel %vm890_vm5, %v2835_v60, %v2083_v42 }
 0x1b1   : > { %v2975_v48 = vpop.permute.xlu0 %2085  ;;  %v2103_v53 = vunpack.i.h.bf16 %v2101_v29  ;;  %v2102_v56 = vunpack.i.l.bf16 %v2101_v29 }
 0x1b2   : > { %935 = vst.msk [vmem:[#allocation3 + $0x10] sm:$0xff] %vm933_vm7, %v925_v40  ;;  %v2088_v5 = vunpack.i.h.bf16 %v2975_v48  ;;  %v2087_v9 = vunpack.i.l.bf16 %v2975_v48 }
 0x1b3   : > { %v897_v23 = vsel %vm890_vm5, %v2887_v4, %v2102_v56  ;;  %v898_v24 = vsel %vm890_vm5, %v2876_v55, %v2103_v53 }
 0x1b4   : > { %v2106_v44 = vpop.permute.xlu1 %2105 }
 0x1b5   : > { %v2096_v52 = vpop.permute.xlu0 %2095  ;;  %v2108_v63 = vunpack.i.h.bf16 %v2106_v44  ;;  %v2107_v12 = vunpack.i.l.bf16 %v2106_v44 }
 0x1b6   : > { %v2098_v57 = vunpack.i.h.bf16 %v2096_v52  ;;  %v2097_v59 = vunpack.i.l.bf16 %v2096_v52 }
 0x1b7   : > { %v895_v19 = vsel %vm890_vm5, %v2910_v16, %v2107_v12  ;;  %v896_v28 = vsel %vm890_vm5, %v2895_v6, %v2108_v63 }
 0x1b8   : > { %v908_v61 = vsel %vm907_vm6, %v891_v8, %v2097_v59  ;;  %v909_v14 = vsel %vm907_vm6, %v892_v10, %v2098_v57  ;;  %v2111_v15 = vpop.permute.xlu1 %2110  ;;  %v904_v59 = vsel %vm890_vm5, %v2853_v58, %v2088_v5  ;;  %v903_v8 = vsel %vm890_vm5, %v2868_v1, %v2087_v9 }
 0x1b9   : > { %v924_v17 = vpack.c.bf16 %v909_v14, %v908_v61  ;;  %v2113_v20 = vunpack.i.h.bf16 %v2111_v15  ;;  %v2112_v21 = vunpack.i.l.bf16 %v2111_v15  ;;  %v2116_v22 = vpop.permute.xlu0 %2115 }
 0x1ba   : > { %v2118_v25 = vunpack.i.h.bf16 %v2116_v22  ;;  %v2117_v7 = vunpack.i.l.bf16 %v2116_v22 }
 0x1bb   : > { %934 = vst.msk [vmem:[#allocation3 + $0x8] sm:$0xff] %vm933_vm7, %v924_v17  ;;  %v915_v51 = vsel %vm907_vm6, %v898_v24, %v2113_v20  ;;  %v914_v60 = vsel %vm907_vm6, %v897_v23, %v2112_v21 }
 0x1bc   : > { %v927_v2 = vpack.c.bf16 %v915_v51, %v914_v60  ;;  %v912_v50 = vsel %vm907_vm6, %v895_v19, %v2117_v7  ;;  %v913_v54 = vsel %vm907_vm6, %v896_v28, %v2118_v25  ;;  %v2121_v62 = vpop.permute.xlu1 %2120 }
 0x1bd   : > { %v926_v55 = vpack.c.bf16 %v913_v54, %v912_v50  ;;  %v2126_v3 = vpop.permute.xlu0 %2125  ;;  %v2123_v4 = vunpack.i.h.bf16 %v2121_v62  ;;  %v2122_v11 = vunpack.i.l.bf16 %v2121_v62 }
 0x1be   : > { %937 = vst.msk [vmem:[#allocation3 + $0x20] sm:$0xff] %vm933_vm7, %v927_v2  ;;  %v2128_v16 = vunpack.i.h.bf16 %v2126_v3  ;;  %v2127_v6 = vunpack.i.l.bf16 %v2126_v3 }
 0x1bf   : > { %936 = vst.msk [vmem:[#allocation3 + $0x18] sm:$0xff] %vm933_vm7, %v926_v55  ;;  %v901_v35 = vsel %vm890_vm5, %v2923_v41, %v2122_v11  ;;  %v902_v36 = vsel %vm890_vm5, %v2905_v13, %v2123_v4 }
 0x1c0   : > { %v2131_v47 = vpop.permute.xlu1 %2130  ;;  %v899_v45 = vsel %vm890_vm5, %v2927_v43, %v2127_v6  ;;  %v900_v46 = vsel %vm890_vm5, %v2916_v31, %v2128_v16  ;;  %v905_v43 = vsel %vm890_vm5, %v2821_v26, %v2077_v32  ;;  %v906_v31 = vsel %vm890_vm5, %v2800_v0, %v2078_v18 }
 0x1c1   : > { %v2133_v30 = vunpack.i.h.bf16 %v2131_v47  ;;  %v2132_v33 = vunpack.i.l.bf16 %v2131_v47  ;;  %v2136_v34 = vpop.permute.xlu0 %2135 }
 0x1c2   : > { %v2138_v37 = vunpack.i.h.bf16 %v2136_v34  ;;  %v2137_v38 = vunpack.i.l.bf16 %v2136_v34 }
 0x1c3   : > { %v918_v40 = vsel %vm907_vm6, %v901_v35, %v2132_v33  ;;  %v919_v29 = vsel %vm907_vm6, %v902_v36, %v2133_v30 }
 0x1c4   : > { %v929_v48 = vpack.c.bf16 %v919_v29, %v918_v40  ;;  %v916_v42 = vsel %vm907_vm6, %v899_v45, %v2137_v38  ;;  %v917_v41 = vsel %vm907_vm6, %v900_v46, %v2138_v37  ;;  %v2146_v49 = vpop.permute.xlu1 %2145 }
 0x1c5   : > { %v928_v44 = vpack.c.bf16 %v917_v41, %v916_v42  ;;  %v2148_v13 = vunpack.i.h.bf16 %v2146_v49  ;;  %v2147_v52 = vunpack.i.l.bf16 %v2146_v49  ;;  %v2141_v53 = vpop.permute.xlu0 %2140 }
 0x1c6   : > { %939 = vst.msk [vmem:[#allocation3 + $0x30] sm:$0xff] %vm933_vm7, %v929_v48  ;;  %v2143_v56 = vunpack.i.h.bf16 %v2141_v53  ;;  %v2142_v57 = vunpack.i.l.bf16 %v2141_v53 }
 0x1c7   : > { %938 = vst.msk [vmem:[#allocation3 + $0x28] sm:$0xff] %vm933_vm7, %v928_v44  ;;  %v923_v10 = vsel %vm907_vm6, %v906_v31, %v2148_v13  ;;  %v922_v26 = vsel %vm907_vm6, %v905_v43, %v2147_v52 }
 0x1c8   : > { %v931_v63 = vpack.c.bf16 %v923_v10, %v922_v26  ;;  %v921_v12 = vsel %vm907_vm6, %v904_v59, %v2143_v56  ;;  %v920_v0 = vsel %vm907_vm6, %v903_v8, %v2142_v57 }
 0x1c9   : > { %v930_v61 = vpack.c.bf16 %v921_v12, %v920_v0 }
 0x1ca   : > { %941 = vst.msk [vmem:[#allocation3 + $0x40] sm:$0xff] %vm933_vm7, %v931_v63 }
 0x1cb   : > { %940 = vst.msk [vmem:[#allocation3 + $0x38] sm:$0xff] %vm933_vm7, %v930_v61 }
 0x1cc   : > { %2316 = dma.done.wait [#allocation4], 256 }
 0x1cd   : > { %2317 = vsyncadd [#allocation4], 4294967040 }
 0x1ce   : > { %2318 = dma.done.wait [#allocation4 + $0x1], 256 }
 0x1cf   : > { %2319 = vsyncadd [#allocation4 + $0x1], 4294967040  ;;  %v2170_v58 = vld [vmem:[%s3341_s2] sm:$0xff]   ;;  %v949_v14 = vld [vmem:[#allocation2 + $0x8] sm:$0xff]  ;;  %s3383_s17 = smov 4   ;;  %p1844_p4 = scmp.ne.s32.totalorder %s2338_s20, 0 }
 0x1d0   : > { %v948_v1 = vld [vmem:[#allocation2] sm:$0xff]  ;;  %v950_v15 = vld [vmem:[#allocation2 + $0x10] sm:$0xff]  ;;  %1930 = vmatprep.subr.bf16.mxu1 %v2170_v58  ;;  %v951_v20 = vld [vmem:[#allocation2 + $0x18] sm:$0xff]  ;;  %v2363_v27 = vmov (!%p1844_p4), 0  }
 0x1d1   : > { %v952_v17 = vpack.c.bf16 %v949_v14, %v948_v1  ;;  %1931 = vmatpush3.bf16.msra.mxu1 %v2170_v58  ;;  %v953_v21 = vpack.c.bf16 %v951_v20, %v950_v15  ;;  %v1842_v22 = vld [vmem:[%s3344_s5] ss:$0 sm:$0xff] }
 0x1d2   : > { %v1843_v24 = vld [vmem:[%s3345_s6] ss:$0 sm:$0xff] }
 0x1d3   : > { %1932 = vmatprep.mubr.msk.bf16.mxu1 %vm473_vm0, %v952_v17 }
 0x1d4   : > { %1933 = vmatmul.mubr.msk.bf16.vlgmr.msra.gmra.mrb[4].mxu1 %vm473_vm0, %v953_v21 }
 0x2a7   : > { %v1934_v23 = vpop.f32.mrb[4].mxu1 }
 0x2a8   : > { %v1026_v25 = vmul.f32 %v1934_v23, %v1842_v22  ;;  %v1002_v7 = vpop.f32.mrb[5].mxu1 }
 0x2a9   : > { %v1024_v19 = vmul.f32 %v1842_v22, %v1002_v7  ;;  %v1935_v28 = vpop.f32.mrb[6].mxu1 }
 0x2aa   : > { %v1037_v51 = vadd.f32 %v1843_v24, %v1026_v25  ;;  %v1027_v60 = vmul.f32 %v1935_v28, %v1842_v22  ;;  %v1005_v2 = vpop.f32.mrb[7].mxu1 }
 0x2ab   : > { %v1035_v50 = vadd.f32 %v1843_v24, %v1024_v19  ;;  %v1025_v54 = vmul.f32 %v1842_v22, %v1005_v2 }
 0x2ac   : > { %v1041_v62 = vmax.f32 %v1037_v51, 0.0  ;;  %v1038_v55 = vadd.f32 %v1843_v24, %v1027_v60 }
 0x2ad   : > { %v1039_v3 = vmax.f32 %v1035_v50, 0.0  ;;  %v1036_v4 = vadd.f32 %v1843_v24, %v1025_v54 }
 0x2ae   : > { %v1042_v11 = vmax.f32 %v1038_v55, 0.0  ;;  %v1056_v6 = vrot.slane %v1041_v62, 1  ;;  %v1044_v18 = vrot.slane %v1041_v62, 7 }
 0x2af   : > { %v1040_v16 = vmax.f32 %v1036_v4, 0.0  ;;  %v1055_v47 = vrot.slane %v1039_v3, 1  ;;  %v1043_v34 = vrot.slane %v1039_v3, 7 }
 0x2b0   : > { %v2155_v32 = vpack.i.bf16 %v1042_v11, %v1041_v62  ;;  %v1058_v5 = vrot.slane %v1042_v11, 1  ;;  %v1046_v9 = vrot.slane %v1042_v11, 7 }
 0x2b1   : > { %v2150_v30 = vpack.i.bf16 %v1040_v16, %v1039_v3  ;;  %v1057_v33 = vrot.slane %v1040_v16, 1  ;;  %v1045_v35 = vrot.slane %v1040_v16, 7 }
 0x2b2   : > { %v1060_v36 = vsel %vm729_vm2, %v1056_v6, %v1058_v5  ;;  %v1062_v37 = vsel %vm729_vm2, %v1058_v5, %v1056_v6  ;;  %v1048_v38 = vsel %vm678_vm3, %v1044_v18, %v1046_v9  ;;  %v1050_v45 = vsel %vm678_vm3, %v1046_v9, %v1044_v18 }
 0x2b3   : > { %2151 = vrot.lane.b32.xlu0 %v2150_v30, %s3383_s17  ;;  %v1059_v46 = vsel %vm729_vm2, %v1055_v47, %v1057_v33  ;;  %v1061_v40 = vsel %vm729_vm2, %v1057_v33, %v1055_v47  ;;  %v1066_v29 = vsel %vm712_vm1, 0.0, %v1062_v37  ;;  %v1047_v48 = vsel %vm678_vm3, %v1043_v34, %v1045_v35 }
 0x2b4   : > { %v1064_v42 = vsel %vm712_vm1, 0.0, %v1061_v40  ;;  %v2165_v41 = vpack.i.bf16 %v1066_v29, %v1060_v36  ;;  %v1049_v49 = vsel %vm678_vm3, %v1045_v35, %v1043_v34  ;;  %v1053_v58 = vsel %vm660_vm4, 0.0, %v1050_v45 }
 0x2b5   : > { %v2160_v44 = vpack.i.bf16 %v1064_v42, %v1059_v46  ;;  %v1051_v39 = vsel %vm660_vm4, 0.0, %v1049_v49 }
 0x2b7   : > { %2156 = vrot.lane.b32.xlu0 %v2155_v32, %s3383_s17  ;;  %2161 = vrot.lane.b32.xlu1 %v2160_v44, %s2360_s30 }
 0x2bb   : > { %2166 = vrot.lane.b32.xlu1 %v2165_v41, %s2360_s30 }
 0x325   : > { %v2152_v13 = vpop.permute.xlu0 %2151 }
 0x326   : > { %v2154_v52 = vunpack.i.h.bf16 %v2152_v13  ;;  %v2153_v53 = vunpack.i.l.bf16 %v2152_v13 }
 0x328   : > { %v1099_v59 = vsel %vm890_vm5, %v1051_v39, %v2153_v53  ;;  %v1100_v8 = vsel %vm890_vm5, %v1047_v48, %v2154_v52 }
 0x329   : > { %v2157_v43 = vpop.permute.xlu0 %2156  ;;  %v2162_v31 = vpop.permute.xlu1 %2161 }
 0x32a   : > { %v2164_v56 = vunpack.i.h.bf16 %v2162_v31  ;;  %v2163_v57 = vunpack.i.l.bf16 %v2162_v31  ;;  %v2159_v10 = vunpack.i.h.bf16 %v2157_v43  ;;  %v2158_v26 = vunpack.i.l.bf16 %v2157_v43 }
 0x32c   : > { %v1103_v63 = vsel %vm907_vm6, %v1099_v59, %v2163_v57  ;;  %v1104_v12 = vsel %vm907_vm6, %v1100_v8, %v2164_v56  ;;  %v1102_v15 = vsel %vm890_vm5, %v1048_v38, %v2159_v10  ;;  %v1101_v17 = vsel %vm890_vm5, %v1053_v58, %v2158_v26 }
 0x32d   : > { %v1107_v0 = vpack.c.bf16 %v1104_v12, %v1103_v63  ;;  %v2167_v61 = vpop.permute.xlu1 %2166  ;;  %1115 = sbr.rel (%p1844_p4) target bundleno = 820 (0x334), region = 76 }
 0x32e   : > { %v2169_v1 = vunpack.i.h.bf16 %v2167_v61  ;;  %v2168_v14 = vunpack.i.l.bf16 %v2167_v61 }
 0x32f   : > { %1109 = vst.msk [vmem:[#allocation3] sm:$0xff] %vm933_vm7, %v1107_v0 }
 0x330   : > { %v1106_v20 = vsel %vm907_vm6, %v1102_v15, %v2169_v1  ;;  %v1105_v21 = vsel %vm907_vm6, %v1101_v17, %v2168_v14  ;;  %1116 = vst.msk [vmem:[#allocation3] sm:$0xff] (!%p1844_p4), %vm933_vm7, %v2363_v27 }
 0x331   : > { %v1108_v22 = vpack.c.bf16 %v1106_v20, %v1105_v21 }
 0x333   : > { %1111 = vst.msk [vmem:[#allocation3 + $0x48] sm:$0xff] %vm933_vm7, %v1108_v22 }
 0x334 PF: > { %p1845_p10 = scmp.ne.s32.totalorder %s2338_s20, 1 }
 0x335   : > { %v2364_v23 = vmov (!%p1845_p10), 0  }
 0x336   : > { %1120 = sbr.rel (%p1845_p10) target bundleno = 829 (0x33d), region = 80  ;;  %1121 = vst.msk [vmem:[#allocation3 + $0x48] sm:$0xff] (!%p1845_p10), %vm933_vm7, %v2364_v23 }
 0x33d PF: > { %v1139_v24 = vld [vmem:[#allocation3 + $0x10] sm:$0xff]  ;;  %v1130_v25 = vld [vmem:[#allocation3 + $0x8] sm:$0xff]  ;;  %s2365_s19 = smov 24   ;;  %s2366_s22 = smov 12   ;;  %v1140_v7 = vld [vmem:[#allocation3 + $0x18] sm:$0xff]  ;;  %vm1273_vm8 = vcmask 1041408  }
 0x33e   : > { %1179 = vrot.lane.b32.xlu1 %v1139_v24, %s2365_s19  ;;  %1155 = vrot.lane.b32.xlu0 %v1130_v25, %s2366_s22  ;;  %v2171_v19 = vld [vmem:[%s3342_s3] sm:$0xff]   ;;  %v2172_v28 = vld [vmem:[%s3342_s3 + $0x8] sm:$0xff]   ;;  %v1135_v54 = vld [vmem:[#allocation3 + $0x30] sm:$0xff]  ;;  %vm1219_vm9 = vcmask 195584   ;;  %vm1256_vm10 = vcmask 293888   ;;  %s3384_s15 = sld [smem:[#allocation27_spill]] }
 0x33f   : > { %v1133_v51 = vld [vmem:[#allocation3 + $0x20] sm:$0xff]  ;;  %1936 = vmatprep.subr.bf16.mxu1 %v2171_v19  ;;  %v2173_v60 = vld [vmem:[%s3342_s3 + $0x10] ss:$0 sps:$4 sm:$0x33]   ;;  %v1142_v2 = vld [vmem:[#allocation3 + $0x28] sm:$0xff]  ;;  %s3385_s13 = sld [smem:[#allocation28_spill]] }
 0x340   : > { %1937 = vmatpush3.bf16.msra.mxu1 %v2171_v19  ;;  %v1275_v50 = vsel %vm1273_vm8, %v2173_v60, 0  ;;  %v1144_v62 = vld [vmem:[#allocation3 + $0x38] sm:$0xff]  ;;  %v1137_v55 = vld [vmem:[#allocation3 + $0x40] sm:$0xff]  ;;  %v1146_v3 = vld [vmem:[#allocation3 + $0x48] sm:$0xff]  ;;  %s3387_s29 = sld [smem:[#allocation30_spill]]  ;;  %s3388_s28 = sld [smem:[#allocation31_spill]] }
 0x341   : > { %1938 = vmatprep.subr.bf16.mxu1 %v2172_v28  ;;  %v1122_v4 = vld [vmem:[#allocation3] sm:$0xff]  ;;  %s1879_s26 = sshll.u32 %s2338_s20, 4  ;;  %s1872_s11 = sshll.u32 %s2342_s21, 5 }
 0x342   : > { %1181 = vrot.lane.b32.xlu1 %v1140_v7, %s2365_s19  ;;  %1157 = vrot.lane.b32.xlu0 %v1139_v24, %s2366_s22  ;;  %s1693_s20 = sadd.s32 %s1879_s26, %s1872_s11  ;;  %s1696_s7 = sshll.u32 %s3033_s4, 4  ;;  %s3280_s7 = int_to_ptr.vmem [resolvable:$true] %s1696_s7 }
 0x343   : > { %s1873_s21 = sshll.u32 %s1693_s20, 7  ;;  %s3389_s25 = sld [smem:[#allocation32_spill]] }
 0x344   : > { %1939 = vmatpush3.bf16.msra.mxu1 %v2172_v28  ;;  %v1444_v59 = vld [vmem:[%s3384_s15] sm:$0x3]  ;;  %s2252_s0 = scalar_lea.vmem %s3280_s7, 2048  ;;  %p3390_p12 = scmp.ne.s32.totalorder %s3377_s14, 0 }
 0x345   : > { %1978 = vmatprep.subr.msk.bf16.mxu1 %vm1273_vm8, %v2173_v60  ;;  %1979 = vmatprep.subr.msk.bf16.mxu0 %vm1273_vm8, %v1444_v59  ;;  %v1470_v8 = vsel %vm1273_vm8, %v1444_v59, 0  ;;  %v3139_v10 = vld [vmem:[%s3385_s13] ss:$0 sm:$0xff]  ;;  %p2253_p8 = scmp.ne.s32.totalorder %s3280_s7, %s2252_s0  ;;  %s2367_s17 = smov [#allocation8]  }
 0x346   : > { %1161 = vrot.lane.b32.xlu1 %v1133_v51, %s2366_s22  ;;  %1159 = vrot.lane.b32.xlu0 %v1140_v7, %s2366_s22 }
 0x347   : > { %1959 = vmatpush3.bf16.msra.mxu0 %v1470_v8  ;;  %p2254_p0 = pnand %p2253_p8, %p3390_p12 }
 0x348   : > { %1941 = vmatpush3.bf16.msra.mxu1 %v1275_v50 }
 0x349   : > { %s3276_s13 = scalar_lea.hbm %s3389_s25, %s1873_s21  ;;  %p2255_p11 = pneg %p2254_p0 }
 0x34a   : > { %1185 = vrot.lane.b32.xlu1 %v1142_v2, %s2365_s19  ;;  %1183 = vrot.lane.b32.xlu0 %v1133_v51, %s2365_s19 }
 0x34e   : > { %1165 = vrot.lane.b32.xlu1 %v1135_v54, %s2366_s22  ;;  %1163 = vrot.lane.b32.xlu0 %v1142_v2, %s2366_s22 }
 0x352   : > { %1189 = vrot.lane.b32.xlu1 %v1144_v62, %s2365_s19  ;;  %1187 = vrot.lane.b32.xlu0 %v1135_v54, %s2365_s19 }
 0x356   : > { %1169 = vrot.lane.b32.xlu1 %v1137_v55, %s2366_s22  ;;  %1167 = vrot.lane.b32.xlu0 %v1144_v62, %s2366_s22 }
 0x35a   : > { %1193 = vrot.lane.b32.xlu1 %v1146_v3, %s2365_s19  ;;  %1191 = vrot.lane.b32.xlu0 %v1137_v55, %s2365_s19  ;;  %s3386_s19 = sld [smem:[#allocation29_spill]] }
 0x360   : > { %v3144_v63 = vld [vmem:[%s3386_s19] ss:$0 sm:$0xff]  ;;  %s2256_s19 = sshll.u32 %s2367_s17, 4  ;;  %s2257_s19 = int_to_ptr.vmem [resolvable:$false] %s2256_s19 }
 0x361   : > { %s2258_s22 = scalar_lea.vmem %s2257_s19, 4096  ;;  %p2259_p13 = scmp.lt.s32.totalorder %s3280_s7, %s2257_s19 }
 0x362   : > { %p2260_p1 = scmp.lt.s32.totalorder %s2258_s22, %s2252_s0 }
 0x364   : > { %p2261_p9 = por %p2260_p1, %p2259_p13 }
 0x366   : > { %p2262_p3 = pnand %p2261_p9, %p2255_p11 }
 0x3b0   : > { %v1180_v11 = vpop.permute.xlu1 %1179  ;;  %v1156_v16 = vpop.permute.xlu0 %1155 }
 0x3b1   : > { %v1197_v6 = vsel %vm933_vm7, %v1122_v4, %v1156_v16 }
 0x3b2   : > { %v1221_v18 = vsel %vm1219_vm9, %v1197_v6, %v1180_v11 }
 0x3b3   : > { %1942 = vmatprep.mubr.msk.bf16.mxu1 %vm1256_vm10, %v1221_v18 }
 0x3b4   : > { %v1182_v32 = vpop.permute.xlu1 %1181  ;;  %v1158_v47 = vpop.permute.xlu0 %1157 }
 0x3b5   : > { %v1200_v5 = vsel %vm933_vm7, %v1130_v25, %v1158_v47 }
 0x3b6   : > { %v1223_v9 = vsel %vm1219_vm9, %v1200_v5, %v1182_v32 }
 0x3b7   : > { %1943 = vmatmul.mubr.msk.bf16.vlgmr.msra.gmra.mrb[8].mxu1 %vm1256_vm10, %v1223_v9 }
 0x3b8   : > { %v1162_v30 = vpop.permute.xlu1 %1161  ;;  %v1160_v33 = vpop.permute.xlu0 %1159 }
 0x3b9   : > { %v1206_v34 = vsel %vm933_vm7, %v1140_v7, %v1162_v30  ;;  %v1203_v35 = vsel %vm933_vm7, %v1139_v24, %v1160_v33 }
 0x3bc   : > { %v1186_v36 = vpop.permute.xlu1 %1185  ;;  %v1184_v37 = vpop.permute.xlu0 %1183 }
 0x3bd   : > { %v1227_v38 = vsel %vm1219_vm9, %v1206_v34, %v1186_v36  ;;  %v1225_v45 = vsel %vm1219_vm9, %v1203_v35, %v1184_v37 }
 0x3be   : > { %1946 = vmatprep.mubr.msk.bf16.mxu1 %vm1256_vm10, %v1225_v45 }
 0x3bf   : > { %1947 = vmatmul.mubr.msk.bf16.gmra.mrb[12].mxu1 %vm1256_vm10, %v1227_v38 }
 0x3c0   : > { %v1166_v46 = vpop.permute.xlu1 %1165  ;;  %v1164_v40 = vpop.permute.xlu0 %1163 }
 0x3c1   : > { %v1212_v29 = vsel %vm933_vm7, %v1142_v2, %v1166_v46  ;;  %v1209_v48 = vsel %vm933_vm7, %v1133_v51, %v1164_v40 }
 0x3c4   : > { %v1190_v42 = vpop.permute.xlu1 %1189  ;;  %v1188_v41 = vpop.permute.xlu0 %1187 }
 0x3c5   : > { %v1231_v49 = vsel %vm1219_vm9, %v1212_v29, %v1190_v42  ;;  %v1229_v44 = vsel %vm1219_vm9, %v1209_v48, %v1188_v41 }
 0x3c6   : > { %1950 = vmatprep.mubr.msk.bf16.mxu1 %vm1256_vm10, %v1229_v44 }
 0x3c7   : > { %1951 = vmatmul.mubr.msk.bf16.gmra.mrb[16].mxu1 %vm1256_vm10, %v1231_v49 }
 0x3c8   : > { %v1170_v13 = vpop.permute.xlu1 %1169  ;;  %v1168_v52 = vpop.permute.xlu0 %1167 }
 0x3c9   : > { %v1218_v53 = vsel %vm933_vm7, %v1144_v62, %v1170_v13  ;;  %v1215_v43 = vsel %vm933_vm7, %v1135_v54, %v1168_v52 }
 0x3cc   : > { %v1194_v31 = vpop.permute.xlu1 %1193  ;;  %v1192_v39 = vpop.permute.xlu0 %1191 }
 0x3cd   : > { %v1235_v56 = vsel %vm1219_vm9, %v1218_v53, %v1194_v31  ;;  %v1233_v57 = vsel %vm1219_vm9, %v1215_v43, %v1192_v39 }
 0x3ce   : > { %1954 = vmatprep.mubr.msk.bf16.mxu1 %vm1256_vm10, %v1233_v57 }
 0x3cf   : > { %1955 = vmatmul.mubr.msk.bf16.gmra.mrb[20].mxu1 %vm1256_vm10, %v1235_v56 }
 0x48a   : > { %v1944_v26 = vpop.f32.mrb[8].mxu1 }
 0x48b   : > { %v1383_v12 = vmul.f32 %v1944_v26, %v3139_v10  ;;  %v1311_v0 = vpop.f32.mrb[9].mxu1 }
 0x48c   : > { %v1381_v61 = vmul.f32 %v3139_v10, %v1311_v0  ;;  %v1945_v58 = vpop.f32.mrb[10].mxu1 }
 0x48d   : > { %v1406_v1 = vadd.f32 %v3144_v63, %v1383_v12  ;;  %v1384_v14 = vmul.f32 %v1945_v58, %v3139_v10  ;;  %v1314_v15 = vpop.f32.mrb[11].mxu1 }
 0x48e   : > { %v1382_v17 = vmul.f32 %v3139_v10, %v1314_v15  ;;  %v1404_v20 = vadd.f32 %v3144_v63, %v1381_v61 }
 0x48f   : > { %v1407_v21 = vadd.f32 %v3144_v63, %v1384_v14  ;;  %v1422_v27 = vmax.f32 %v1406_v1, 0.0 }
 0x490   : > { %v1405_v22 = vadd.f32 %v3144_v63, %v1382_v17  ;;  %v1420_v25 = vmax.f32 %v1404_v20, 0.0 }
 0x491   : > { %v1423_v23 = vmax.f32 %v1407_v21, 0.0 }
 0x492   : > { %v1948_v24 = vpop.f32.mrb[12].mxu1  ;;  %v1421_v7 = vmax.f32 %v1405_v22, 0.0 }
 0x493   : > { %v1387_v19 = vmul.f32 %v1948_v24, %v3139_v10  ;;  %v1327_v28 = vpop.f32.mrb[13].mxu1  ;;  %v1437_v51 = vpack.c.bf16 %v1423_v23, %v1422_v27  ;;  %v1617_v23 = vld [vmem:[%s2561_s12 + $0x10] sm:$0xff] }
 0x494   : > { %v1385_v60 = vmul.f32 %v3139_v10, %v1327_v28  ;;  %v1949_v2 = vpop.f32.mrb[14].mxu1  ;;  %v1436_v50 = vpack.c.bf16 %v1421_v7, %v1420_v25 }
 0x495   : > { %v1410_v54 = vadd.f32 %v3144_v63, %v1387_v19  ;;  %v1388_v62 = vmul.f32 %v1949_v2, %v3139_v10  ;;  %v1330_v55 = vpop.f32.mrb[15].mxu1  ;;  %v1615_v19 = vld [vmem:[%s2561_s12] sm:$0xff]  ;;  %v1618_v2 = vld [vmem:[%s2561_s12 + $0x18] sm:$0xff] }
 0x496   : > { %v1408_v3 = vadd.f32 %v3144_v63, %v1385_v60  ;;  %v1386_v4 = vmul.f32 %v3139_v10, %v1330_v55  ;;  %1960 = vmatprep.mubr.msk.bf16.mxu0 %vm890_vm5, %v1436_v50  ;;  %v1616_v55 = vld [vmem:[%s2561_s12 + $0x8] sm:$0xff] }
 0x497   : > { %v1411_v11 = vadd.f32 %v3144_v63, %v1388_v62  ;;  %1961 = vmatmul.mubr.msk.bf16.vlgmr.msra.gmra.mrb[12].mxu0 %vm890_vm5, %v1437_v51  ;;  %v1426_v6 = vmax.f32 %v1410_v54, 0.0 }
 0x498   : > { %v1409_v16 = vadd.f32 %v3144_v63, %v1386_v4  ;;  %v1424_v32 = vmax.f32 %v1408_v3, 0.0 }
 0x499   : > { %v1427_v18 = vmax.f32 %v1411_v11, 0.0 }
 0x49a   : > { %v1425_v47 = vmax.f32 %v1409_v16, 0.0  ;;  %v1952_v5 = vpop.f32.mrb[16].mxu1 }
 0x49b   : > { %v1391_v9 = vmul.f32 %v1952_v5, %v3139_v10  ;;  %v1343_v30 = vpop.f32.mrb[17].mxu1  ;;  %v1439_v33 = vpack.c.bf16 %v1427_v18, %v1426_v6 }
 0x49c   : > { %v1389_v34 = vmul.f32 %v3139_v10, %v1343_v30  ;;  %v1953_v35 = vpop.f32.mrb[18].mxu1  ;;  %v1438_v36 = vpack.c.bf16 %v1425_v47, %v1424_v32 }
 0x49d   : > { %v1414_v37 = vadd.f32 %v3144_v63, %v1391_v9  ;;  %v1392_v38 = vmul.f32 %v1953_v35, %v3139_v10  ;;  %v1346_v45 = vpop.f32.mrb[19].mxu1 }
 0x49e   : > { %v1412_v46 = vadd.f32 %v3144_v63, %v1389_v34  ;;  %v1390_v40 = vmul.f32 %v3139_v10, %v1346_v45  ;;  %1964 = vmatprep.mubr.msk.bf16.mxu0 %vm890_vm5, %v1438_v36 }
 0x49f   : > { %v1415_v29 = vadd.f32 %v3144_v63, %v1392_v38  ;;  %1965 = vmatmul.mubr.msk.bf16.gmra.mrb[16].mxu0 %vm890_vm5, %v1439_v33  ;;  %v1430_v42 = vmax.f32 %v1414_v37, 0.0  ;;  %v1621_v33 = vld [vmem:[%s2561_s12 + $0x30] sm:$0xff]  ;;  %v1619_v37 = vld [vmem:[%s2561_s12 + $0x20] sm:$0xff] }
 0x4a0   : > { %v1413_v48 = vadd.f32 %v3144_v63, %v1390_v40  ;;  %v1428_v49 = vmax.f32 %v1412_v46, 0.0  ;;  %v1622_v40 = vld [vmem:[%s2561_s12 + $0x38] sm:$0xff] }
 0x4a1   : > { %v1431_v41 = vmax.f32 %v1415_v29, 0.0 }
 0x4a2   : > { %v1429_v44 = vmax.f32 %v1413_v48, 0.0  ;;  %v1956_v13 = vpop.f32.mrb[20].mxu1 }
 0x4a3   : > { %v1395_v52 = vmul.f32 %v1956_v13, %v3139_v10  ;;  %v1359_v53 = vpop.f32.mrb[21].mxu1  ;;  %v1441_v43 = vpack.c.bf16 %v1431_v41, %v1430_v42  ;;  %v1620_v41 = vld [vmem:[%s2561_s12 + $0x28] sm:$0xff] }
 0x4a4   : > { %v1393_v31 = vmul.f32 %v3139_v10, %v1359_v53  ;;  %v1957_v39 = vpop.f32.mrb[22].mxu1  ;;  %v1440_v56 = vpack.c.bf16 %v1429_v44, %v1428_v49 }
 0x4a5   : > { %v1418_v57 = vadd.f32 %v3144_v63, %v1395_v52  ;;  %v1396_v59 = vmul.f32 %v1957_v39, %v3139_v10  ;;  %v1362_v8 = vpop.f32.mrb[23].mxu1 }
 0x4a6   : > { %v1416_v26 = vadd.f32 %v3144_v63, %v1393_v31  ;;  %v1394_v12 = vmul.f32 %v3139_v10, %v1362_v8  ;;  %1968 = vmatprep.mubr.msk.bf16.mxu0 %vm890_vm5, %v1440_v56  ;;  %v3189_v10 = vld [vmem:[%s3387_s29] ss:$0 sm:$0xff] }
 0x4a7   : > { %v1419_v0 = vadd.f32 %v3144_v63, %v1396_v59  ;;  %1969 = vmatmul.mubr.msk.bf16.gmra.mrb[20].mxu0 %vm890_vm5, %v1441_v43  ;;  %v1434_v58 = vmax.f32 %v1418_v57, 0.0  ;;  %v1625_v8 = vld [vmem:[%s2561_s12 + $0x50] sm:$0xff] }
 0x4a8   : > { %v1417_v61 = vadd.f32 %v3144_v63, %v1394_v12  ;;  %v1432_v14 = vmax.f32 %v1416_v26, 0.0  ;;  %v3194_v63 = vld [vmem:[%s3388_s28] ss:$0 sm:$0xff] }
 0x4a9   : > { %v1435_v1 = vmax.f32 %v1419_v0, 0.0 }
 0x4aa   : > { %v1433_v15 = vmax.f32 %v1417_v61, 0.0  ;;  %v1623_v61 = vld [vmem:[%s2561_s12 + $0x40] sm:$0xff] }
 0x4ab   : > { %v1443_v17 = vpack.c.bf16 %v1435_v1, %v1434_v58 }
 0x4ac   : > { %v1442_v20 = vpack.c.bf16 %v1433_v15, %v1432_v14  ;;  %v1626_v15 = vld [vmem:[%s2561_s12 + $0x58] sm:$0xff] }
 0x4ae   : > { %1972 = vmatprep.mubr.msk.bf16.mxu0 %vm890_vm5, %v1442_v20 }
 0x4af   : > { %1973 = vmatmul.mubr.msk.bf16.gmra.mrb[24].mxu0 %vm890_vm5, %v1443_v17 }
 0x56a   : > { %v1962_v21 = vpop.f32.mrb[12].mxu0 }
 0x56b   : > { %v1578_v22 = vmul.f32 %v1962_v21, %v3189_v10  ;;  %v1506_v27 = vpop.f32.mrb[13].mxu0 }
 0x56c   : > { %v1576_v24 = vmul.f32 %v3189_v10, %v1506_v27  ;;  %v1963_v25 = vpop.f32.mrb[14].mxu0 }
 0x56d   : > { %v1601_v7 = vadd.f32 %v3194_v63, %v1578_v22  ;;  %v1579_v28 = vmul.f32 %v1963_v25, %v3189_v10  ;;  %v1509_v51 = vpop.f32.mrb[15].mxu0  ;;  %v1624_v22 = vld [vmem:[%s2561_s12 + $0x48] sm:$0xff] }
 0x56e   : > { %v1599_v60 = vadd.f32 %v3194_v63, %v1576_v24  ;;  %v1577_v50 = vmul.f32 %v3189_v10, %v1509_v51 }
 0x56f   : > { %v1633_v54 = vadd.f32 %v1617_v23, %v1601_v7  ;;  %v1602_v62 = vadd.f32 %v3194_v63, %v1579_v28 }
 0x570   : > { %v1631_v3 = vadd.f32 %v1615_v19, %v1599_v60  ;;  %v1600_v4 = vadd.f32 %v3194_v63, %v1577_v50 }
 0x571   : > { %v1649_v11 = vmax.f32 %v1633_v54, 0.0  ;;  %v1634_v16 = vadd.f32 %v1618_v2, %v1602_v62  ;;  %v1629_v54 = vld [vmem:[%s2561_s12 + $0x70] sm:$0xff] }
 0x572   : > { %v1647_v6 = vmax.f32 %v1631_v3, 0.0  ;;  %v1632_v18 = vadd.f32 %v1616_v55, %v1600_v4  ;;  %v1966_v32 = vpop.f32.mrb[16].mxu0  ;;  %v1627_v4 = vld [vmem:[%s2561_s12 + $0x60] sm:$0xff] }
 0x573   : > { %1665 = vst.msk [vmem:[%s3033_s4 + $0x10] sm:$0xff] %vm473_vm0, %v1649_v11  ;;  %v1650_v47 = vmax.f32 %v1634_v16, 0.0  ;;  %v1582_v5 = vmul.f32 %v1966_v32, %v3189_v10  ;;  %v1522_v9 = vpop.f32.mrb[17].mxu0 }
 0x574   : > { %1663 = vst.msk [vmem:[%s3033_s4] sm:$0xff] %vm473_vm0, %v1647_v6  ;;  %v1648_v30 = vmax.f32 %v1632_v18, 0.0  ;;  %v1580_v34 = vmul.f32 %v3189_v10, %v1522_v9  ;;  %v1967_v35 = vpop.f32.mrb[18].mxu0  ;;  %v1630_v18 = vld [vmem:[%s2561_s12 + $0x78] sm:$0xff]  ;;  %v1628_v9 = vld [vmem:[%s2561_s12 + $0x68] sm:$0xff]  ;;  %s1680_s12 = scalar_lea.sflag [#allocation7], %s2555_s10 }
 0x575   : > { %1666 = vst.msk [vmem:[%s3033_s4 + $0x18] sm:$0xff] %vm473_vm0, %v1650_v47  ;;  %v1605_v36 = vadd.f32 %v3194_v63, %v1582_v5  ;;  %v1583_v38 = vmul.f32 %v1967_v35, %v3189_v10  ;;  %v1525_v45 = vpop.f32.mrb[19].mxu0 }
 0x576   : > { %1664 = vst.msk [vmem:[%s3033_s4 + $0x8] sm:$0xff] %vm473_vm0, %v1648_v30  ;;  %v1603_v46 = vadd.f32 %v3194_v63, %v1580_v34  ;;  %v1581_v29 = vmul.f32 %v3189_v10, %v1525_v45 }
 0x577   : > { %v1637_v48 = vadd.f32 %v1621_v33, %v1605_v36  ;;  %v1606_v42 = vadd.f32 %v3194_v63, %v1583_v38 }
 0x578   : > { %v1635_v49 = vadd.f32 %v1619_v37, %v1603_v46  ;;  %v1604_v44 = vadd.f32 %v3194_v63, %v1581_v29 }
 0x579   : > { %v1653_v13 = vmax.f32 %v1637_v48, 0.0  ;;  %v1638_v52 = vadd.f32 %v1622_v40, %v1606_v42 }
 0x57a   : > { %v1651_v53 = vmax.f32 %v1635_v49, 0.0  ;;  %v1636_v43 = vadd.f32 %v1620_v41, %v1604_v44  ;;  %v1970_v31 = vpop.f32.mrb[20].mxu0 }
 0x57b   : > { %1669 = vst.msk [vmem:[%s3033_s4 + $0x30] sm:$0xff] %vm473_vm0, %v1653_v13  ;;  %v1654_v39 = vmax.f32 %v1638_v52, 0.0  ;;  %v1586_v56 = vmul.f32 %v1970_v31, %v3189_v10  ;;  %v1538_v57 = vpop.f32.mrb[21].mxu0 }
 0x57c   : > { %1667 = vst.msk [vmem:[%s3033_s4 + $0x20] sm:$0xff] %vm473_vm0, %v1651_v53  ;;  %v1652_v59 = vmax.f32 %v1636_v43, 0.0  ;;  %v1584_v26 = vmul.f32 %v3189_v10, %v1538_v57  ;;  %v1971_v12 = vpop.f32.mrb[22].mxu0 }
 0x57d   : > { %1670 = vst.msk [vmem:[%s3033_s4 + $0x38] sm:$0xff] %vm473_vm0, %v1654_v39  ;;  %v1609_v0 = vadd.f32 %v3194_v63, %v1586_v56  ;;  %v1587_v58 = vmul.f32 %v1971_v12, %v3189_v10  ;;  %v1541_v1 = vpop.f32.mrb[23].mxu0 }
 0x57e   : > { %1668 = vst.msk [vmem:[%s3033_s4 + $0x28] sm:$0xff] %vm473_vm0, %v1652_v59  ;;  %v1607_v14 = vadd.f32 %v3194_v63, %v1584_v26  ;;  %v1585_v17 = vmul.f32 %v3189_v10, %v1541_v1 }
 0x57f   : > { %v1641_v20 = vadd.f32 %v1625_v8, %v1609_v0  ;;  %v1610_v21 = vadd.f32 %v3194_v63, %v1587_v58 }
 0x580   : > { %v1639_v27 = vadd.f32 %v1623_v61, %v1607_v14  ;;  %v1608_v23 = vadd.f32 %v3194_v63, %v1585_v17 }
 0x581   : > { %v1657_v24 = vmax.f32 %v1641_v20, 0.0  ;;  %v1642_v25 = vadd.f32 %v1626_v15, %v1610_v21 }
 0x582   : > { %v1655_v7 = vmax.f32 %v1639_v27, 0.0  ;;  %v1640_v19 = vadd.f32 %v1624_v22, %v1608_v23  ;;  %v1974_v28 = vpop.f32.mrb[24].mxu0 }
 0x583   : > { %1673 = vst.msk [vmem:[%s3033_s4 + $0x50] sm:$0xff] %vm473_vm0, %v1657_v24  ;;  %v1658_v51 = vmax.f32 %v1642_v25, 0.0  ;;  %v1590_v60 = vmul.f32 %v1974_v28, %v3189_v10  ;;  %v1554_v2 = vpop.f32.mrb[25].mxu0 }
 0x584   : > { %1671 = vst.msk [vmem:[%s3033_s4 + $0x40] sm:$0xff] %vm473_vm0, %v1655_v7  ;;  %v1656_v50 = vmax.f32 %v1640_v19, 0.0  ;;  %v1588_v62 = vmul.f32 %v3189_v10, %v1554_v2  ;;  %v1975_v55 = vpop.f32.mrb[26].mxu0 }
 0x585   : > { %1674 = vst.msk [vmem:[%s3033_s4 + $0x58] sm:$0xff] %vm473_vm0, %v1658_v51  ;;  %v1613_v3 = vadd.f32 %v3194_v63, %v1590_v60  ;;  %v1591_v11 = vmul.f32 %v1975_v55, %v3189_v10  ;;  %v1557_v16 = vpop.f32.mrb[27].mxu0 }
 0x586   : > { %1672 = vst.msk [vmem:[%s3033_s4 + $0x48] sm:$0xff] %vm473_vm0, %v1656_v50  ;;  %v1611_v6 = vadd.f32 %v3194_v63, %v1588_v62  ;;  %v1589_v32 = vmul.f32 %v3189_v10, %v1557_v16 }
 0x587   : > { %v1645_v47 = vadd.f32 %v1629_v54, %v1613_v3  ;;  %v1614_v5 = vadd.f32 %v3194_v63, %v1591_v11 }
 0x588   : > { %v1643_v30 = vadd.f32 %v1627_v4, %v1611_v6  ;;  %v1612_v33 = vadd.f32 %v3194_v63, %v1589_v32 }
 0x589   : > { %v1661_v34 = vmax.f32 %v1645_v47, 0.0  ;;  %v1646_v35 = vadd.f32 %v1630_v18, %v1614_v5 }
 0x58a   : > { %v1659_v36 = vmax.f32 %v1643_v30, 0.0  ;;  %v1644_v37 = vadd.f32 %v1628_v9, %v1612_v33 }
 0x58b   : > { %1677 = vst.msk [vmem:[%s3033_s4 + $0x70] sm:$0xff] %vm473_vm0, %v1661_v34  ;;  %v1662_v10 = vmax.f32 %v1646_v35, 0.0 }
 0x58c   : > { %1675 = vst.msk [vmem:[%s3033_s4 + $0x60] sm:$0xff] %vm473_vm0, %v1659_v36  ;;  %v1660_v38 = vmax.f32 %v1644_v37, 0.0 }
 0x58d   : > { %1678 = vst.msk [vmem:[%s3033_s4 + $0x78] sm:$0xff] %vm473_vm0, %v1662_v10 }
 0x58e   : > { %1676 = vst.msk [vmem:[%s3033_s4 + $0x68] sm:$0xff] %vm473_vm0, %v1660_v38 }
 0x58f   : > { %2265 = shalt.err (!%p2262_p3)
}
 0x590   : > { %s2266_s4 = scalar_lea.hbm %s3276_s13, 2048  ;;  %s2270_s8 = scalar_lea.hbm %s3389_s25, 8192 }
 0x591   : > { %p2267_p5 = scmp.ne.s32.totalorder %s3276_s13, %s2266_s4  ;;  %p2271_p2 = scmp.lt.u32.totalorder %s3276_s13, %s3389_s25 }
 0x592   : > { %p2272_p4 = scmp.lt.u32.totalorder %s2270_s8, %s2266_s4  ;;  %p2274_p8 = scmp.lt.u32.totalorder %s2266_s4, %s3276_s13 }
 0x593   : > { %p2268_p6 = pnand %p2267_p5, %p3390_p12 }
 0x594   : > { %p2273_p10 = por %p2272_p4, %p2271_p2 }
 0x595   : > { %p2269_p7 = pneg %p2268_p6 }
 0x596   : > { %p2275_p0 = por %p2274_p8, %p2273_p10 }
 0x598   : > { %p2276_p11 = pnand %p2275_p0, %p2269_p7 }
 0x59a   : > { %2279 = shalt.err (!%p2276_p11)
}
 0x59b   : > { %s2368_s26 = smov 128  }
 0x59c   : > { %1982 = dma.vmem_to_hbm [thread:$0]  (%p3390_p12), %s3280_s7, 2048, %s3276_s13, %s1680_s12, %s2368_s26, %s2368_s26, %s2360_s30  }
 0x59d PF: > { %s3391_s11 = sld [smem:[#allocation19_spill]]  ;;  %p1993_p13 = scmp.ge.s32.totalorder %s2354_s24, 2 }
 0x59e   : > { %p3392_p1 = scmp.ne.s32.totalorder %s3378_s27, 0 }
 0x5a0   : > { %p1989_p9 = pnand %p1993_p13, %p3392_p1 }
 0x5a3   : > { %s1711_s20 = sand.u32 1, %s3391_s11  }
 0x5a4   : > { %s1712_s21 = scalar_lea.sflag [#allocation7], %s1711_s20 }
 0x5a5   : > { %2321 = dma.done.wait (!%p1989_p9), %s1712_s21, 2048  }
 0x5a6   : > { %2323 = vsyncadd (!%p1989_p9), %s1712_s21, 4294965248  ;;  %s27_s24 = sadd.s32 1, %s2354_s24   ;;  %s3393_s14 = sld [smem:[#allocation20_spill]] }
 0x5a7   : > { %p24_p3 = scmp.ge.s32.totalorder %s27_s24, 6   ;;  %s3394_s19 = sld [smem:[#allocation25_spill]] }
 0x5a8   : > { %s3395_s20 = sld [smem:[#allocation21_spill]]  ;;  %s3396_s21 = sld [smem:[#allocation22_spill]] }
 0x5a9   : > { %s3397_s22 = sld [smem:[#allocation23_spill]]  ;;  %s3398_s23 = sld [smem:[#allocation24_spill]] }
 0x5aa   : > { %s3399_s17 = smov %s2330_s18  ;;  %26 = sbr.rel (!%p24_p3) target bundleno = 15 (0xf), region = 129 }
 0x5ac   : > { %s3400_s18 = smov %s3393_s14 }
 0x5b1   :  { %1717 = vsyncpa [#allocation6], 1 }
 0x5b2   :  { %1719 = vsyncpa [#allocation6 + $0x1], 1 }
 0x5b3   :  { %1720 = vsyncpa [#allocation7], 1 }
 0x5b4   :  { %1722 = vsyncpa [#allocation7 + $0x1], 1 }
 0x5b5   :  { %1723 = vsyncmov [#allocation4] }
 0x5b8   :  { %s1724_s27 = vpop.sfrf %1723 }
 0x5b9   :  { %p1876_p12 = scmp.ne.s32.totalorder %s1724_s27, 0 }
 0x5bb   :  { %1728 = shalt.err (%p1876_p12)  }
 0x5bc   :  { %1730 = vsyncmov [#allocation4 + $0x1] }
 0x5bf   :  { %s1731_s10 = vpop.sfrf %1730 }
 0x5c0   :  { %p1877_p5 = scmp.ne.s32.totalorder %s1731_s10, 0 }
 0x5c2   :  { %1735 = shalt.err (%p1877_p5)  }

</bundles_post_ra>
